<compile_context>
chip_gen: v7x
topology: tpu7x:2x2x1
jax: 0.10.0
libtpu: 0.0.40
codegen_flags: <defaults>
</compile_context>

<pallas_src>
import jax
import jax.numpy as jnp
from jax.experimental import pallas as pl
from jax.experimental.pallas import tpu as pltpu

C1 = 0.01 ** 2
C2 = 0.03 ** 2


def _ssim_kernel(x_ref, y_ref, m_ref, o_ref):
    # Each ref holds a (P, H, W) block of image planes in VMEM.
    # Cast to f32 in-kernel; the HBM copies stay in the caller's dtype.
    x = x_ref[...].astype(jnp.float32)
    y = y_ref[...].astype(jnp.float32)
    m = m_ref[...].astype(jnp.float32)
    _, H, W = x.shape
    Ho, Wo = H - 2, W - 2

    def pool3(a):
        # Separable 3x3 average pool, stride 1, VALID (== nn.AvgPool2d(3, 1)):
        # 2 vertical adds + 2 horizontal adds instead of 8 adds.
        r = a[:, 0:Ho, :] + a[:, 1:Ho + 1, :] + a[:, 2:Ho + 2, :]      # (P, Ho, W)
        c = r[:, :, 0:Wo] + r[:, :, 1:Wo + 1] + r[:, :, 2:Wo + 2]      # (P, Ho, Wo)
        return c * (1.0 / 9.0)

    mu_x = pool3(x)
    mu_y = pool3(y)
    sigma_x = pool3(x * x) - mu_x * mu_x
    sigma_y = pool3(y * y) - mu_y * mu_y
    sigma_xy = pool3(x * y) - mu_x * mu_y

    ssim_n = (2.0 * mu_x * mu_y + C1) * (2.0 * sigma_xy + C2)
    ssim_d = (mu_x * mu_x + mu_y * mu_y + C1) * (sigma_x + sigma_y + C2)
    ssim_mask = pool3(m)

    # EUP reciprocal instead of a VALU divide (approx ~1e-4 rel error; the
    # self-test tolerance below accounts for it).
    inv_d = pl.reciprocal(ssim_d, approx=True)
    out = ssim_mask * jnp.clip((1.0 - ssim_n * inv_d) * 0.5, 0.0, 1.0)
    o_ref[...] = out.astype(o_ref.dtype)


def _choose_planes_per_block(num_planes, h, w, in_bytes_per_elem):
    """Pick P (planes per grid step) so one block + temps fit in ~24 MiB of
    scoped VMEM (safe under the 32 MiB default on v5e/v6e/v7x) and the grid
    stays >= 2 (so v7x's two TensorCores both get work)."""
    ho, wo = h - 2, w - 2
    per_plane = (
        2 * h * w * in_bytes_per_elem   # double-buffered inputs (x + y + mask)
        + 2 * ho * wo * 4               # double-buffered f32 output
        + 12 * h * w * 4                # in-kernel f32 temporaries (estimate)
    )
    budget = 24 * 1024 * 1024
    cap = max(1, budget // per_plane)
    if num_planes >= 2:
        cap = min(cap, max(1, num_planes // 2))   # keep grid length >= 2
    # largest divisor of num_planes that is <= cap (avoids partial blocks)
    p = 1
    for d in range(1, int(cap) + 1):
        if num_planes % d == 0:
            p = d
    return p


def ssim_pallas(x, y, mask):
    """x, y: (N, C, H, W); mask: (N, C, H, W) or (N, 1, H, W) (broadcast like
    PyTorch).  Returns (N, C, H-2, W-2) float32."""
    N, C, H, W = x.shape
    Ho, Wo = H - 2, W - 2
    NC = N * C

    if mask.shape != x.shape:
        # PyTorch broadcasts an (N, 1, H, W) mask; mirror that behavior.
        # (Materializes the broadcast; cheap relative to x/y traffic.)
        mask = jnp.broadcast_to(mask, x.shape)

    # Keep source dtypes in HBM; the kernel casts to f32 on load.
    xf = x.reshape(NC, H, W)
    yf = y.reshape(NC, H, W)
    mf = mask.reshape(NC, H, W)

    bytes_per_elem = (
        jnp.dtype(x.dtype).itemsize
        + jnp.dtype(y.dtype).itemsize
        + jnp.dtype(mask.dtype).itemsize
    )
    P = _choose_planes_per_block(NC, H, W, bytes_per_elem)

    in_spec = pl.BlockSpec((P, H, W), lambda i: (i, 0, 0))
    out = pl.pallas_call(
        _ssim_kernel,
        out_shape=jax.ShapeDtypeStruct((NC, Ho, Wo), jnp.float32),
        grid=(NC // P,),
        in_specs=[in_spec, in_spec, in_spec],
        out_specs=pl.BlockSpec((P, Ho, Wo), lambda i: (i, 0, 0)),
        compiler_params=pltpu.CompilerParams(
            dimension_semantics=("parallel",)),
    )(xf, yf, mf)
    return out.reshape(N, C, Ho, Wo)


def _ssim_reference(x, y, mask):
    # Pure-JAX reference (exact division) for correctness checking.
    x = x.astype(jnp.float32)
    y = y.astype(jnp.float32)
    m = jnp.broadcast_to(mask, x.shape).astype(jnp.float32)
    H, W = x.shape[-2:]
    Ho, Wo = H - 2, W - 2

    def pool3(a):
        acc = jnp.zeros(a.shape[:-2] + (Ho, Wo), jnp.float32)
        for di in range(3):
            for dj in range(3):
                acc = acc + a[..., di:di + Ho, dj:dj + Wo]
        return acc / 9.0

    mu_x = pool3(x)
    mu_y = pool3(y)
    sigma_x = pool3(x * x) - mu_x ** 2
    sigma_y = pool3(y * y) - mu_y ** 2
    sigma_xy = pool3(x * y) - mu_x * mu_y
    ssim_n = (2 * mu_x * mu_y + C1) * (2 * sigma_xy + C2)
    ssim_d = (mu_x ** 2 + mu_y ** 2 + C1) * (sigma_x + sigma_y + C2)
    ssim_mask = pool3(m)
    return ssim_mask * jnp.clip((1 - ssim_n / ssim_d) / 2, 0.0, 1.0)


if __name__ == "__main__":
    key = jax.random.PRNGKey(0)
    k1, k2, k3 = jax.random.split(key, 3)
    N, C, H, W = 2, 4, 16, 16
    x = jax.random.uniform(k1, (N, C, H, W), dtype=jnp.float32)
    y = jax.random.uniform(k2, (N, C, H, W), dtype=jnp.float32)
    mask = (jax.random.uniform(k3, (N, C, H, W)) > 0.3).astype(jnp.float32)

    out = jax.block_until_ready(ssim_pallas(x, y, mask))
    ref = _ssim_reference(x, y, mask)

    assert out.shape == (N, C, H - 2, W - 2), out.shape
    # Tolerance relaxed vs. 1e-5 because the kernel uses the EUP approximate
    # reciprocal for 1/SSIM_d (rel error ~1e-4).
    assert jnp.allclose(out, ref, atol=5e-3, rtol=5e-3), float(
        jnp.max(jnp.abs(out - ref)))
    print("KERNEL_OK")
</pallas_src>

<mosaic_0001>
module attributes {stable_mosaic.version = 11 : i64} {
  func.func @_ssim_kernel(%arg0: i32, %arg1: memref<4x16x16xf32, #tpu.memory_space<vmem>>, %arg2: memref<4x16x16xf32, #tpu.memory_space<vmem>>, %arg3: memref<4x16x16xf32, #tpu.memory_space<vmem>>, %arg4: memref<4x14x14xf32, #tpu.memory_space<vmem>>) attributes {dimension_semantics = [#tpu.dimension_semantics<parallel>], iteration_bounds = array<i64: 2>, scalar_prefetch = 0 : i64, scratch_operands = 0 : i64, tpu.core_type = #tpu.core_type<tc>, window_params = [{transform_indices = @transform_0, window_bounds = array<i64: 4, 16, 16>}, {transform_indices = @transform_1, window_bounds = array<i64: 4, 16, 16>}, {transform_indices = @transform_2, window_bounds = array<i64: 4, 16, 16>}, {transform_indices = @transform_3, window_bounds = array<i64: 4, 14, 14>}]} {
    %c0 = arith.constant 0 : index
    %c0_0 = arith.constant 0 : index
    %c0_1 = arith.constant 0 : index
    %0 = vector.load %arg1[%c0, %c0_0, %c0_1] : memref<4x16x16xf32, #tpu.memory_space<vmem>>, vector<4x16x16xf32>
    %c0_2 = arith.constant 0 : index
    %c0_3 = arith.constant 0 : index
    %c0_4 = arith.constant 0 : index
    %1 = vector.load %arg2[%c0_2, %c0_3, %c0_4] : memref<4x16x16xf32, #tpu.memory_space<vmem>>, vector<4x16x16xf32>
    %c0_5 = arith.constant 0 : index
    %c0_6 = arith.constant 0 : index
    %c0_7 = arith.constant 0 : index
    %2 = vector.load %arg3[%c0_5, %c0_6, %c0_7] : memref<4x16x16xf32, #tpu.memory_space<vmem>>, vector<4x16x16xf32>
    %3 = vector.extract_strided_slice %0 {offsets = [0, 0, 0], sizes = [4, 14, 16], strides = [1, 1, 1]} : vector<4x16x16xf32> to vector<4x14x16xf32>
    %4 = vector.extract_strided_slice %0 {offsets = [0, 1, 0], sizes = [4, 14, 16], strides = [1, 1, 1]} : vector<4x16x16xf32> to vector<4x14x16xf32>
    %5 = arith.addf %3, %4 : vector<4x14x16xf32>
    %6 = vector.extract_strided_slice %0 {offsets = [0, 2, 0], sizes = [4, 14, 16], strides = [1, 1, 1]} : vector<4x16x16xf32> to vector<4x14x16xf32>
    %7 = arith.addf %5, %6 : vector<4x14x16xf32>
    %8 = vector.extract_strided_slice %7 {offsets = [0, 0, 0], sizes = [4, 14, 14], strides = [1, 1, 1]} : vector<4x14x16xf32> to vector<4x14x14xf32>
    %9 = vector.extract_strided_slice %7 {offsets = [0, 0, 1], sizes = [4, 14, 14], strides = [1, 1, 1]} : vector<4x14x16xf32> to vector<4x14x14xf32>
    %10 = arith.addf %8, %9 : vector<4x14x14xf32>
    %11 = vector.extract_strided_slice %7 {offsets = [0, 0, 2], sizes = [4, 14, 14], strides = [1, 1, 1]} : vector<4x14x16xf32> to vector<4x14x14xf32>
    %12 = arith.addf %10, %11 : vector<4x14x14xf32>
    %cst = arith.constant 0.111111112 : f32
    %13 = vector.broadcast %cst : f32 to vector<4x14x14xf32>
    %14 = arith.mulf %12, %13 : vector<4x14x14xf32>
    %15 = vector.extract_strided_slice %1 {offsets = [0, 0, 0], sizes = [4, 14, 16], strides = [1, 1, 1]} : vector<4x16x16xf32> to vector<4x14x16xf32>
    %16 = vector.extract_strided_slice %1 {offsets = [0, 1, 0], sizes = [4, 14, 16], strides = [1, 1, 1]} : vector<4x16x16xf32> to vector<4x14x16xf32>
    %17 = arith.addf %15, %16 : vector<4x14x16xf32>
    %18 = vector.extract_strided_slice %1 {offsets = [0, 2, 0], sizes = [4, 14, 16], strides = [1, 1, 1]} : vector<4x16x16xf32> to vector<4x14x16xf32>
    %19 = arith.addf %17, %18 : vector<4x14x16xf32>
    %20 = vector.extract_strided_slice %19 {offsets = [0, 0, 0], sizes = [4, 14, 14], strides = [1, 1, 1]} : vector<4x14x16xf32> to vector<4x14x14xf32>
    %21 = vector.extract_strided_slice %19 {offsets = [0, 0, 1], sizes = [4, 14, 14], strides = [1, 1, 1]} : vector<4x14x16xf32> to vector<4x14x14xf32>
    %22 = arith.addf %20, %21 : vector<4x14x14xf32>
    %23 = vector.extract_strided_slice %19 {offsets = [0, 0, 2], sizes = [4, 14, 14], strides = [1, 1, 1]} : vector<4x14x16xf32> to vector<4x14x14xf32>
    %24 = arith.addf %22, %23 : vector<4x14x14xf32>
    %cst_8 = arith.constant 0.111111112 : f32
    %25 = vector.broadcast %cst_8 : f32 to vector<4x14x14xf32>
    %26 = arith.mulf %24, %25 : vector<4x14x14xf32>
    %27 = arith.mulf %0, %0 : vector<4x16x16xf32>
    %28 = vector.extract_strided_slice %27 {offsets = [0, 0, 0], sizes = [4, 14, 16], strides = [1, 1, 1]} : vector<4x16x16xf32> to vector<4x14x16xf32>
    %29 = vector.extract_strided_slice %27 {offsets = [0, 1, 0], sizes = [4, 14, 16], strides = [1, 1, 1]} : vector<4x16x16xf32> to vector<4x14x16xf32>
    %30 = arith.addf %28, %29 : vector<4x14x16xf32>
    %31 = vector.extract_strided_slice %27 {offsets = [0, 2, 0], sizes = [4, 14, 16], strides = [1, 1, 1]} : vector<4x16x16xf32> to vector<4x14x16xf32>
    %32 = arith.addf %30, %31 : vector<4x14x16xf32>
    %33 = vector.extract_strided_slice %32 {offsets = [0, 0, 0], sizes = [4, 14, 14], strides = [1, 1, 1]} : vector<4x14x16xf32> to vector<4x14x14xf32>
    %34 = vector.extract_strided_slice %32 {offsets = [0, 0, 1], sizes = [4, 14, 14], strides = [1, 1, 1]} : vector<4x14x16xf32> to vector<4x14x14xf32>
    %35 = arith.addf %33, %34 : vector<4x14x14xf32>
    %36 = vector.extract_strided_slice %32 {offsets = [0, 0, 2], sizes = [4, 14, 14], strides = [1, 1, 1]} : vector<4x14x16xf32> to vector<4x14x14xf32>
    %37 = arith.addf %35, %36 : vector<4x14x14xf32>
    %cst_9 = arith.constant 0.111111112 : f32
    %38 = vector.broadcast %cst_9 : f32 to vector<4x14x14xf32>
    %39 = arith.mulf %37, %38 : vector<4x14x14xf32>
    %40 = arith.mulf %14, %14 : vector<4x14x14xf32>
    %41 = arith.subf %39, %40 : vector<4x14x14xf32>
    %42 = arith.mulf %1, %1 : vector<4x16x16xf32>
    %43 = vector.extract_strided_slice %42 {offsets = [0, 0, 0], sizes = [4, 14, 16], strides = [1, 1, 1]} : vector<4x16x16xf32> to vector<4x14x16xf32>
    %44 = vector.extract_strided_slice %42 {offsets = [0, 1, 0], sizes = [4, 14, 16], strides = [1, 1, 1]} : vector<4x16x16xf32> to vector<4x14x16xf32>
    %45 = arith.addf %43, %44 : vector<4x14x16xf32>
    %46 = vector.extract_strided_slice %42 {offsets = [0, 2, 0], sizes = [4, 14, 16], strides = [1, 1, 1]} : vector<4x16x16xf32> to vector<4x14x16xf32>
    %47 = arith.addf %45, %46 : vector<4x14x16xf32>
    %48 = vector.extract_strided_slice %47 {offsets = [0, 0, 0], sizes = [4, 14, 14], strides = [1, 1, 1]} : vector<4x14x16xf32> to vector<4x14x14xf32>
    %49 = vector.extract_strided_slice %47 {offsets = [0, 0, 1], sizes = [4, 14, 14], strides = [1, 1, 1]} : vector<4x14x16xf32> to vector<4x14x14xf32>
    %50 = arith.addf %48, %49 : vector<4x14x14xf32>
    %51 = vector.extract_strided_slice %47 {offsets = [0, 0, 2], sizes = [4, 14, 14], strides = [1, 1, 1]} : vector<4x14x16xf32> to vector<4x14x14xf32>
    %52 = arith.addf %50, %51 : vector<4x14x14xf32>
    %cst_10 = arith.constant 0.111111112 : f32
    %53 = vector.broadcast %cst_10 : f32 to vector<4x14x14xf32>
    %54 = arith.mulf %52, %53 : vector<4x14x14xf32>
    %55 = arith.mulf %26, %26 : vector<4x14x14xf32>
    %56 = arith.subf %54, %55 : vector<4x14x14xf32>
    %57 = arith.mulf %0, %1 : vector<4x16x16xf32>
    %58 = vector.extract_strided_slice %57 {offsets = [0, 0, 0], sizes = [4, 14, 16], strides = [1, 1, 1]} : vector<4x16x16xf32> to vector<4x14x16xf32>
    %59 = vector.extract_strided_slice %57 {offsets = [0, 1, 0], sizes = [4, 14, 16], strides = [1, 1, 1]} : vector<4x16x16xf32> to vector<4x14x16xf32>
    %60 = arith.addf %58, %59 : vector<4x14x16xf32>
    %61 = vector.extract_strided_slice %57 {offsets = [0, 2, 0], sizes = [4, 14, 16], strides = [1, 1, 1]} : vector<4x16x16xf32> to vector<4x14x16xf32>
    %62 = arith.addf %60, %61 : vector<4x14x16xf32>
    %63 = vector.extract_strided_slice %62 {offsets = [0, 0, 0], sizes = [4, 14, 14], strides = [1, 1, 1]} : vector<4x14x16xf32> to vector<4x14x14xf32>
    %64 = vector.extract_strided_slice %62 {offsets = [0, 0, 1], sizes = [4, 14, 14], strides = [1, 1, 1]} : vector<4x14x16xf32> to vector<4x14x14xf32>
    %65 = arith.addf %63, %64 : vector<4x14x14xf32>
    %66 = vector.extract_strided_slice %62 {offsets = [0, 0, 2], sizes = [4, 14, 14], strides = [1, 1, 1]} : vector<4x14x16xf32> to vector<4x14x14xf32>
    %67 = arith.addf %65, %66 : vector<4x14x14xf32>
    %cst_11 = arith.constant 0.111111112 : f32
    %68 = vector.broadcast %cst_11 : f32 to vector<4x14x14xf32>
    %69 = arith.mulf %67, %68 : vector<4x14x14xf32>
    %70 = arith.mulf %14, %26 : vector<4x14x14xf32>
    %71 = arith.subf %69, %70 : vector<4x14x14xf32>
    %cst_12 = arith.constant 2.000000e+00 : f32
    %72 = vector.broadcast %cst_12 : f32 to vector<4x14x14xf32>
    %73 = arith.mulf %72, %14 : vector<4x14x14xf32>
    %74 = arith.mulf %73, %26 : vector<4x14x14xf32>
    %cst_13 = arith.constant 9.99999974E-5 : f32
    %75 = vector.broadcast %cst_13 : f32 to vector<4x14x14xf32>
    %76 = arith.addf %74, %75 : vector<4x14x14xf32>
    %cst_14 = arith.constant 2.000000e+00 : f32
    %77 = vector.broadcast %cst_14 : f32 to vector<4x14x14xf32>
    %78 = arith.mulf %77, %71 : vector<4x14x14xf32>
    %cst_15 = arith.constant 8.99999984E-4 : f32
    %79 = vector.broadcast %cst_15 : f32 to vector<4x14x14xf32>
    %80 = arith.addf %78, %79 : vector<4x14x14xf32>
    %81 = arith.mulf %76, %80 : vector<4x14x14xf32>
    %82 = arith.mulf %14, %14 : vector<4x14x14xf32>
    %83 = arith.mulf %26, %26 : vector<4x14x14xf32>
    %84 = arith.addf %82, %83 : vector<4x14x14xf32>
    %cst_16 = arith.constant 9.99999974E-5 : f32
    %85 = vector.broadcast %cst_16 : f32 to vector<4x14x14xf32>
    %86 = arith.addf %84, %85 : vector<4x14x14xf32>
    %87 = arith.addf %41, %56 : vector<4x14x14xf32>
    %cst_17 = arith.constant 8.99999984E-4 : f32
    %88 = vector.broadcast %cst_17 : f32 to vector<4x14x14xf32>
    %89 = arith.addf %87, %88 : vector<4x14x14xf32>
    %90 = arith.mulf %86, %89 : vector<4x14x14xf32>
    %91 = vector.extract_strided_slice %2 {offsets = [0, 0, 0], sizes = [4, 14, 16], strides = [1, 1, 1]} : vector<4x16x16xf32> to vector<4x14x16xf32>
    %92 = vector.extract_strided_slice %2 {offsets = [0, 1, 0], sizes = [4, 14, 16], strides = [1, 1, 1]} : vector<4x16x16xf32> to vector<4x14x16xf32>
    %93 = arith.addf %91, %92 : vector<4x14x16xf32>
    %94 = vector.extract_strided_slice %2 {offsets = [0, 2, 0], sizes = [4, 14, 16], strides = [1, 1, 1]} : vector<4x16x16xf32> to vector<4x14x16xf32>
    %95 = arith.addf %93, %94 : vector<4x14x16xf32>
    %96 = vector.extract_strided_slice %95 {offsets = [0, 0, 0], sizes = [4, 14, 14], strides = [1, 1, 1]} : vector<4x14x16xf32> to vector<4x14x14xf32>
    %97 = vector.extract_strided_slice %95 {offsets = [0, 0, 1], sizes = [4, 14, 14], strides = [1, 1, 1]} : vector<4x14x16xf32> to vector<4x14x14xf32>
    %98 = arith.addf %96, %97 : vector<4x14x14xf32>
    %99 = vector.extract_strided_slice %95 {offsets = [0, 0, 2], sizes = [4, 14, 14], strides = [1, 1, 1]} : vector<4x14x16xf32> to vector<4x14x14xf32>
    %100 = arith.addf %98, %99 : vector<4x14x14xf32>
    %cst_18 = arith.constant 0.111111112 : f32
    %101 = vector.broadcast %cst_18 : f32 to vector<4x14x14xf32>
    %102 = arith.mulf %100, %101 : vector<4x14x14xf32>
    %103 = tpu.reciprocal %90 {approx = true} : vector<4x14x14xf32> -> vector<4x14x14xf32>
    %104 = arith.mulf %81, %103 : vector<4x14x14xf32>
    %cst_19 = arith.constant 1.000000e+00 : f32
    %105 = vector.broadcast %cst_19 : f32 to vector<4x14x14xf32>
    %106 = arith.subf %105, %104 : vector<4x14x14xf32>
    %cst_20 = arith.constant 5.000000e-01 : f32
    %107 = vector.broadcast %cst_20 : f32 to vector<4x14x14xf32>
    %108 = arith.mulf %106, %107 : vector<4x14x14xf32>
    %cst_21 = arith.constant 0.000000e+00 : f32
    %cst_22 = arith.constant 1.000000e+00 : f32
    %109 = vector.broadcast %cst_21 : f32 to vector<4x14x14xf32>
    %110 = arith.maximumf %109, %108 : vector<4x14x14xf32>
    %111 = vector.broadcast %cst_22 : f32 to vector<4x14x14xf32>
    %112 = arith.minimumf %111, %110 : vector<4x14x14xf32>
    %113 = arith.mulf %102, %112 : vector<4x14x14xf32>
    %c0_23 = arith.constant 0 : index
    %c0_24 = arith.constant 0 : index
    %c0_25 = arith.constant 0 : index
    %114 = vector.load %arg4[%c0_23, %c0_24, %c0_25] : memref<4x14x14xf32, #tpu.memory_space<vmem>>, vector<4x14x14xf32>
    tpu.vector_store %arg4[%c0_23, %c0_24, %c0_25], %113 {strides = array<i32>} : memref<4x14x14xf32, #tpu.memory_space<vmem>>, vector<4x14x14xf32>,
    return
  }
  func.func @transform_0(%arg0: i32) -> (i32, i32, i32) {
    %c0_i32 = arith.constant 0 : i32
    %c0_i32_0 = arith.constant 0 : i32
    %c0_i32_1 = arith.constant 0 : i32
    return %arg0, %c0_i32, %c0_i32_0 : i32, i32, i32
  }
  func.func @transform_1(%arg0: i32) -> (i32, i32, i32) {
    %c0_i32 = arith.constant 0 : i32
    %c0_i32_0 = arith.constant 0 : i32
    %c0_i32_1 = arith.constant 0 : i32
    return %arg0, %c0_i32, %c0_i32_0 : i32, i32, i32
  }
  func.func @transform_2(%arg0: i32) -> (i32, i32, i32) {
    %c0_i32 = arith.constant 0 : i32
    %c0_i32_0 = arith.constant 0 : i32
    %c0_i32_1 = arith.constant 0 : i32
    return %arg0, %c0_i32, %c0_i32_0 : i32, i32, i32
  }
  func.func @transform_3(%arg0: i32) -> (i32, i32, i32) {
    %c0_i32 = arith.constant 0 : i32
    %c0_i32_0 = arith.constant 0 : i32
    %c0_i32_1 = arith.constant 0 : i32
    return %arg0, %c0_i32, %c0_i32_0 : i32, i32, i32
  }
}

</mosaic_0001>

<bundles_post_ra>
// kernel: tpu_custom_call.1
= control target key start
LH: loop header
LB: loop body
LE: loop exit
PB: predicated region body
PF: predicated region fallthrough
CT: control target
= control target key end

     0   :  { %8 = vsyncpa [#allocation3], 0  ;;  %s2956_s0 = inlined_call_operand.hbm [shape: f32[8,16,16], index: 0, kind: input, shape index: {}]   ;;  %s2957_s1 = inlined_call_operand.hbm [shape: f32[8,16,16], index: 1, kind: input, shape index: {}]   ;;  %s2958_s2 = inlined_call_operand.hbm [shape: f32[8,16,16], index: 2, kind: input, shape index: {}]   ;;  %s2959_s3 = inlined_call_operand.vmem [shape: f32[8,14,14], index: 3, kind: output, shape index: {}]  }
   0x1   :  { %10 = vsyncpa [#allocation3 + $0x1], 0 }
   0x2   :  { %11 = vsyncpa [#allocation5], 0 }
   0x3   :  { %13 = vsyncpa [#allocation5 + $0x1], 0  ;;  %s1763_s12 = smov 0   ;;  %s1765_s13 = smov 0  }
   0x4   :  { %s1767_s14 = smov 0   ;;  %s1769_s15 = smov 0  }
   0x5 LB: > { %s1782_s16 = sadd.s32 4294967295, %s1734_s15   ;;  %s1785_s17 = sadd.s32 1, %s1734_s15   ;;  %s1734_s15 = sphi %s1769_s15, %s3117_s15   ;;  %s1730_s14 = sphi %s1767_s14, %s3116_s14   ;;  %s1726_s13 = sphi %s1765_s13, %s3115_s13   ;;  %s1722_s12 = sphi %s1763_s12, %s3114_s12  }
   0x6   : > { %s23_s18 = ssub.s32 %s1734_s15, %s1785_s17  ;;  %s26_s19 = sadd.s32 1, %s1730_s14 }
   0x7   : > { %p24_p0 = scmp.eq.s32.totalorder %s23_s18, 0  ;;  %p33_p1 = scmp.ne.s32.totalorder %s1730_s14, %s1726_s13 }
   0x8   : > { %p34_p2 = scmp.eq.s32.totalorder %s1734_s15, 0  ;;  %p39_p3 = scmp.ne.s32.totalorder %s1726_s13, %s1722_s12 }
   0x9   : > { %s1795_s20 = scalar_select %p24_p0, %s1730_s14, %s26_s19  }
   0xa   : > { %p35_p4 = por %p34_p2, %p33_p1  ;;  %p40_p5 = scmp.eq.s32.totalorder %s1782_s16, 0 }
   0xb   : > { %p1553_p6 = scmp.lt.s32.totalorder %s1734_s15, 2  ;;  %s141_s22 = sand.u32 1, %s1730_s14  }
   0xc   : > { %p1799_p7 = por %p40_p5, %p39_p3  ;;  %s1806_s23 = sshll.u32 %s141_s22, 6 }
   0xd   : > { %s1809_s24 = sshll.u32 %s1734_s15, 10  ;;  %p1811_p8 = pnand %p1553_p6, %p35_p4 }
   0xe   : > { %s3008_s21 = scalar_select %p1799_p7, 1, 0 }
   0xf   : > { %s163_s26 = sand.u32 1, %s1734_s15   ;;  %s1820_s29 = scalar_lea.hbm %s2957_s1, %s1809_s24 }
  0x10   : > { %s167_s30 = scalar_lea.vmem [#allocation4], %s1806_s23  ;;  %s1827_s5 = scalar_lea.sflag [#allocation5], %s163_s26 }
  0x11   : > { %s175_s4 = sshll.u32 %s167_s30, 4  ;;  %s1606_s6 = scalar_lea.hbm %s1820_s29, 1024  ;;  %s1824_s4 = int_to_ptr.vmem [resolvable:$true] %s175_s4 }
  0x12   : > { %p1607_p11 = scmp.ne.s32.totalorder %s1820_s29, %s1606_s6  ;;  %p1833_p12 = pneg %p1811_p8 }
  0x13   : > { %s1611_s10 = scalar_lea.hbm %s2957_s1, 2048  ;;  %p1612_p1 = scmp.lt.u32.totalorder %s1820_s29, %s2957_s1 }
  0x14   : > { %p1609_p13 = pnand %p1833_p12, %p1607_p11  ;;  %p1613_p2 = scmp.lt.u32.totalorder %s1611_s10, %s1606_s6 }
  0x15   : > { %p1615_p4 = scmp.lt.u32.totalorder %s1606_s6, %s1820_s29 }
  0x16   : > { %p1610_p0 = pneg %p1609_p13  ;;  %p1614_p3 = por %p1613_p2, %p1612_p1 }
  0x18   : > { %p1616_p5 = por %p1615_p4, %p1614_p3 }
  0x1a   : > { %p1617_p6 = pnand %p1616_p5, %p1610_p0 }
  0x1c   : > { %1620 = shalt.err (!%p1617_p6)
}
  0x1d   : > { %s1621_s18 = scalar_lea.vmem %s1824_s4, 1024  ;;  %s1736_s19 = smov [#allocation4]  }
  0x1e   : > { %p1622_p11 = scmp.ne.s32.totalorder %s1824_s4, %s1621_s18  ;;  %s1626_s26 = sshll.u32 %s1736_s19, 4  ;;  %s1627_s26 = int_to_ptr.vmem [resolvable:$false] %s1626_s26 }
  0x1f   : > { %s1628_s27 = scalar_lea.vmem %s1627_s26, 2048  ;;  %p1629_p10 = scmp.lt.s32.totalorder %s1824_s4, %s1627_s26 }
  0x20   : > { %p1624_p13 = pnand %p1622_p11, %p1833_p12  ;;  %p1630_p7 = scmp.lt.s32.totalorder %s1628_s27, %s1621_s18 }
  0x22   : > { %p1625_p9 = pneg %p1624_p13  ;;  %p1631_p1 = por %p1630_p7, %p1629_p10 }
  0x24   : > { %p1632_p2 = pnand %p1631_p1, %p1625_p9 }
  0x26   : > { %1635 = shalt.err (!%p1632_p2)
}
  0x27   : > { %s1737_s28 = smov 128   ;;  %s1738_s30 = smov 8  }
  0x28   : > { %1549 = dma.hbm_to_vmem [thread:$0]  (!%p1811_p8), %s1820_s29, 1024, %s1824_s4, %s1827_s5, %s1737_s28, %s1737_s28, %s1738_s30  }
  0x29   : > { %p3011_p7 = scmp.lt.s32.totalorder %s1734_s15, 3  ;;  %p3012_p9 = scmp.ge.s32.totalorder %s1734_s15, 1 }
  0x2a   : > { %s1872_s10 = scalar_lea.hbm %s2956_s0, %s1809_s24  ;;  %s145_s11 = scalar_lea.vmem [#allocation2], %s1806_s23 }
  0x2b   : > { %p1864_p10 = pnand %p3012_p9, %p3011_p7  ;;  %s153_s12 = sshll.u32 %s145_s11, 4  ;;  %s1875_s12 = int_to_ptr.vmem [resolvable:$true] %s153_s12 }
  0x2c   : > { %s1881_s15 = scalar_lea.hbm %s2958_s2, %s1809_s24  ;;  %s1885_s18 = scalar_lea.sflag [#allocation3], %s141_s22 }
  0x2d   : > { %s3013_s6 = scalar_select %p1864_p10, 1, 0 }
  0x2e   : > { %s1636_s19 = scalar_lea.hbm %s1872_s10, 1024  ;;  %s1641_s8 = scalar_lea.hbm %s2956_s0, 2048 }
  0x2f   : > { %p1637_p0 = scmp.ne.s32.totalorder %s1872_s10, %s1636_s19  ;;  %p1642_p5 = scmp.lt.u32.totalorder %s1872_s10, %s2956_s0 }
  0x30   : > { %p1643_p6 = scmp.lt.u32.totalorder %s1641_s8, %s1636_s19  ;;  %p1645_p13 = scmp.lt.u32.totalorder %s1636_s19, %s1872_s10 }
  0x31   : > { %p1639_p3 = pnand %p1637_p0, %p1833_p12 }
  0x32   : > { %p1644_p11 = por %p1643_p6, %p1642_p5 }
  0x33   : > { %p1640_p4 = pneg %p1639_p3 }
  0x34   : > { %p1646_p1 = por %p1645_p13, %p1644_p11 }
  0x36   : > { %p1647_p2 = pnand %p1646_p1, %p1640_p4 }
  0x38   : > { %1650 = shalt.err (!%p1647_p2)
}
  0x39   : > { %s1651_s22 = scalar_lea.vmem %s1875_s12, 1024  ;;  %s1739_s24 = smov [#allocation2]  }
  0x3a   : > { %p1652_p7 = scmp.ne.s32.totalorder %s1875_s12, %s1651_s22  ;;  %s1656_s29 = sshll.u32 %s1739_s24, 4  ;;  %s1657_s29 = int_to_ptr.vmem [resolvable:$false] %s1656_s29 }
  0x3b   : > { %s1658_s4 = scalar_lea.vmem %s1657_s29, 2048  ;;  %p1659_p3 = scmp.lt.s32.totalorder %s1875_s12, %s1657_s29 }
  0x3c   : > { %p1654_p9 = pnand %p1652_p7, %p1833_p12  ;;  %p1660_p10 = scmp.lt.s32.totalorder %s1658_s4, %s1651_s22 }
  0x3e   : > { %p1655_p0 = pneg %p1654_p9  ;;  %p1661_p5 = por %p1660_p10, %p1659_p3 }
  0x40   : > { %p1662_p6 = pnand %p1661_p5, %p1655_p0 }
  0x42   : > { %1665 = shalt.err (!%p1662_p6)
}
  0x43   : > { %1546 = dma.hbm_to_vmem [thread:$0]  (!%p1811_p8), %s1872_s10, 1024, %s1875_s12, %s1885_s18, %s1737_s28, %s1737_s28, %s1738_s30  }
  0x44   : > { %s189_s19 = scalar_lea.vmem [#allocation6], %s1806_s23  ;;  %s1666_s27 = scalar_lea.hbm %s1881_s15, 1024 }
  0x45   : > { %s197_s26 = sshll.u32 %s189_s19, 4  ;;  %p1667_p10 = scmp.ne.s32.totalorder %s1881_s15, %s1666_s27  ;;  %s1913_s26 = int_to_ptr.vmem [resolvable:$true] %s197_s26 }
  0x46   : > { %s1671_s11 = scalar_lea.hbm %s2958_s2, 2048  ;;  %p1672_p13 = scmp.lt.u32.totalorder %s1881_s15, %s2958_s2 }
  0x47   : > { %p1669_p4 = pnand %p1667_p10, %p1833_p12  ;;  %p1673_p1 = scmp.lt.u32.totalorder %s1671_s11, %s1666_s27 }
  0x48   : > { %p1675_p7 = scmp.lt.u32.totalorder %s1666_s27, %s1881_s15 }
  0x49   : > { %p1670_p11 = pneg %p1669_p4  ;;  %p1674_p2 = por %p1673_p1, %p1672_p13 }
  0x4b   : > { %p1676_p9 = por %p1675_p7, %p1674_p2 }
  0x4d   : > { %p1677_p0 = pnand %p1676_p9, %p1670_p11 }
  0x4f   : > { %1680 = shalt.err (!%p1677_p0)
}
  0x50   : > { %s1681_s23 = scalar_lea.vmem %s1913_s26, 1024  ;;  %s1740_s10 = smov [#allocation6]  }
  0x51   : > { %p1682_p3 = scmp.ne.s32.totalorder %s1913_s26, %s1681_s23  ;;  %s1686_s12 = sshll.u32 %s1740_s10, 4  ;;  %s1687_s12 = int_to_ptr.vmem [resolvable:$false] %s1686_s12 }
  0x52   : > { %s1688_s18 = scalar_lea.vmem %s1687_s12, 2048  ;;  %p1689_p10 = scmp.lt.s32.totalorder %s1913_s26, %s1687_s12 }
  0x53   : > { %p1684_p5 = pnand %p1682_p3, %p1833_p12  ;;  %p1690_p4 = scmp.lt.s32.totalorder %s1688_s18, %s1681_s23 }
  0x55   : > { %p1685_p6 = pneg %p1684_p5  ;;  %p1691_p13 = por %p1690_p4, %p1689_p10 }
  0x57   : > { %p1692_p1 = pnand %p1691_p13, %p1685_p6 }
  0x59   : > { %1695 = shalt.err (!%p1692_p1)
}
  0x5a   : > { %1552 = dma.hbm_to_vmem [thread:$0]  (!%p1811_p8), %s1881_s15, 1024, %s1913_s26, %s1827_s5, %s1737_s28, %s1737_s28, %s1738_s30  }
  0x5b   : > { %p3014_p12 = scmp.ne.s32.totalorder %s3013_s6, 0 }
  0x5d   : > { %209 = sbr.rel (%p3014_p12) target bundleno = 425 (0x1a9), region = 32 }
  0x64   : > { %s211_s7 = sand.u32 1, %s1726_s13   ;;  %p3015_p11 = scmp.ne.s32.totalorder %s3008_s21, 0 }
  0x65   : > { %s1943_s29 = sshll.u32 %s211_s7, 6  ;;  %s212_s4 = scalar_lea.sflag [#allocation3], %s211_s7 }
  0x66   : > { %s1946_s19 = scalar_lea.vmem [#allocation2], %s1943_s29 }
  0x67   : > { %1713 = dma.done.wait (%p3015_p11), %s212_s4, 1024  }
  0x68   : > { %1715 = vsyncadd (%p3015_p11), %s212_s4, 4294966272  ;;  %s220_s25 = sand.u32 1, %s1782_s16   ;;  %s1954_s28 = scalar_lea.vmem [#allocation4], %s1943_s29 }
  0x69   : > { %s221_s5 = scalar_lea.sflag [#allocation5], %s220_s25 }
  0x6a   : > { %1717 = dma.done.wait (%p3015_p11), %s221_s5, 2048  }
  0x6b   : > { %1719 = vsyncadd (%p3015_p11), %s221_s5, 4294965248  ;;  %v1961_v0 = vld [vmem:[%s1946_s19 + $0x18] sm:$0xff]  ;;  %v1964_v1 = vld [vmem:[%s1946_s19 + $0x8] sm:$0xff]  ;;  %vm309_vm0 = vcmask 1046528   ;;  %vm338_vm1 = vcmask 1045504   ;;  %s1741_s21 = smov 127  }
  0x6c   : > { %v1967_v2 = vld [vmem:[%s1946_s19 + $0x28] sm:$0xff]  ;;  %v314_v3 = vrot.slane %v1961_v0, 1  ;;  %v343_v4 = vrot.slane %v1961_v0, 2  ;;  %v311_v5 = vrot.slane %v1964_v1, 1  ;;  %v340_v6 = vrot.slane %v1964_v1, 2  ;;  %v1974_v7 = vld [vmem:[%s1946_s19] sm:$0xff] }
  0x6d   : > { %v1977_v8 = vld [vmem:[%s1946_s19 + $0x38] sm:$0xff]  ;;  %v317_v9 = vrot.slane %v1967_v2, 1  ;;  %v310_v10 = vrot.slane %v1974_v7, 1  ;;  %v339_v11 = vrot.slane %v1974_v7, 2  ;;  %v1983_v12 = vld [vmem:[%s1946_s19 + $0x20] sm:$0xff]  ;;  %v346_v15 = vrot.slane %v1967_v2, 2 }
  0x6e   : > { %v333_v13 = vadd.f32 %v314_v3, %v1961_v0  ;;  %v331_v14 = vadd.f32 %v311_v5, %v1964_v1  ;;  %v320_v16 = vrot.slane %v1977_v8, 1  ;;  %v1990_v17 = vld [vmem:[%s1946_s19 + $0x10] sm:$0xff]  ;;  %v316_v21 = vrot.slane %v1983_v12, 1  ;;  %v2024_v39 = vld [vmem:[%s1954_s28 + $0x8] sm:$0xff]  ;;  %v2027_v40 = vld [vmem:[%s1954_s28] sm:$0xff]  ;;  %s1742_s30 = smov 126  }
  0x6f   : > { %v335_v18 = vadd.f32 %v317_v9, %v1967_v2  ;;  %v312_v19 = vsel %vm309_vm0, %v310_v10, %v311_v5  ;;  %v341_v20 = vsel %vm338_vm1, %v339_v11, %v340_v6  ;;  %v349_v25 = vrot.slane %v1977_v8, 2  ;;  %v2003_v26 = vld [vmem:[%s1946_s19 + $0x30] sm:$0xff]  ;;  %v2041_v46 = vld [vmem:[%s1954_s28 + $0x18] sm:$0xff]  ;;  %v2064_v59 = vld [vmem:[%s1954_s28 + $0x28] sm:$0xff]  ;;  %s2326_s6 = scalar_lea.vmem [#allocation6], %s1943_s29  ;;  %s1525_s15 = sshll.u32 %s1782_s16, 2 }
  0x70   : > { %v1996_v22 = vadd.f32 %v343_v4, %v333_v13  ;;  %v1998_v23 = vadd.f32 %v340_v6, %v331_v14  ;;  %v330_v24 = vadd.f32 %v312_v19, %v1974_v7  ;;  %v337_v27 = vadd.f32 %v320_v16, %v1977_v8  ;;  %v2044_v47 = vld [vmem:[%s1954_s28 + $0x10] sm:$0xff]  ;;  %p2904_p8 = scmp.lt.s32.totalorder %s1525_s15, 7 }
  0x71   : > { %v318_v28 = vsel %vm309_vm0, %v316_v21, %v317_v9  ;;  %v345_v29 = vrot.slane %v1983_v12, 2  ;;  %v313_v30 = vrot.slane %v1990_v17, 1  ;;  %v2013_v31 = vadd.f32 %v346_v15, %v335_v18  ;;  %v2101_v21 = vld [vmem:[%s1954_s28 + $0x38] sm:$0xff] }
  0x72   : > { %381 = vrot.lane.b32.xlu1 %v1996_v22, %s1741_s21  ;;  %377 = vrot.lane.b32.xlu0 %v1998_v23, %s1741_s21  ;;  %v2015_v32 = vadd.f32 %v341_v20, %v330_v24  ;;  %v334_v33 = vadd.f32 %v318_v28, %v1983_v12  ;;  %v342_v34 = vrot.slane %v1990_v17, 2  ;;  %v319_v37 = vrot.slane %v2003_v26, 1  ;;  %s3119_s15 = smov (!%p2904_p8, %s1525_s15), 7 }
  0x73   : > { %v347_v35 = vsel %vm338_vm1, %v345_v29, %v346_v15  ;;  %v315_v36 = vsel %vm309_vm0, %v313_v30, %v314_v3  ;;  %v348_v38 = vrot.slane %v2003_v26, 2  ;;  %v2029_v41 = vadd.f32 %v349_v25, %v337_v27  ;;  %v2071_v3 = vld [vmem:[%s1954_s28 + $0x20] sm:$0xff]  ;;  %s1536_s27 = sshll.u32 %s3119_s15, 4 }
  0x74   : > { %v321_v42 = vsel %vm309_vm0, %v319_v37, %v320_v16  ;;  %v2036_v43 = vadd.f32 %v347_v35, %v334_v33  ;;  %v332_v44 = vadd.f32 %v315_v36, %v1990_v17  ;;  %v344_v48 = vsel %vm338_vm1, %v342_v34, %v343_v4  ;;  %s2919_s9 = scalar_lea.vmem %s2959_s3, %s1536_s27 }
  0x75   : > { %v336_v45 = vadd.f32 %v321_v42, %v2003_v26  ;;  %v350_v49 = vsel %vm338_vm1, %v348_v38, %v349_v25  ;;  %v456_v50 = vrot.slane %v2024_v39, 1  ;;  %v455_v51 = vrot.slane %v2027_v40, 1 }
  0x76   : > { %385 = vrot.lane.b32.xlu1 %v2013_v31, %s1741_s21  ;;  %375 = vrot.lane.b32.xlu0 %v2015_v32, %s1741_s21  ;;  %v459_v52 = vrot.slane %v2041_v46, 1  ;;  %v458_v53 = vrot.slane %v2044_v47, 1  ;;  %v2056_v54 = vadd.f32 %v344_v48, %v332_v44  ;;  %v484_v56 = vrot.slane %v2024_v39, 2 }
  0x77   : > { %v2058_v55 = vadd.f32 %v350_v49, %v336_v45  ;;  %v483_v57 = vrot.slane %v2027_v40, 2  ;;  %v457_v58 = vsel %vm309_vm0, %v455_v51, %v456_v50  ;;  %v476_v60 = vadd.f32 %v456_v50, %v2024_v39 }
  0x78   : > { %v487_v61 = vrot.slane %v2041_v46, 2  ;;  %v460_v62 = vsel %vm309_vm0, %v458_v53, %v459_v52  ;;  %v486_v63 = vrot.slane %v2044_v47, 2  ;;  %v475_v4 = vadd.f32 %v457_v58, %v2027_v40 }
  0x79   : > { %v485_v5 = vsel %vm338_vm1, %v483_v57, %v484_v56  ;;  %v478_v6 = vadd.f32 %v459_v52, %v2041_v46  ;;  %v462_v9 = vrot.slane %v2064_v59, 1  ;;  %v2083_v10 = vmul.f32 %v1961_v0, %v1961_v0 }
  0x7a   : > { %389 = vrot.lane.b32.xlu1 %v2029_v41, %s1741_s21  ;;  %383 = vrot.lane.b32.xlu0 %v2036_v43, %s1741_s21  ;;  %v593_v11 = vmul.f32 %v1990_v17, %v1990_v17  ;;  %v477_v13 = vadd.f32 %v460_v62, %v2044_v47  ;;  %v461_v14 = vrot.slane %v2071_v3, 1  ;;  %v2089_v15 = vadd.f32 %v484_v56, %v476_v60  ;;  %v2146_v62 = vld [vmem:[%s1954_s28 + $0x30] sm:$0xff] }
  0x7b   : > { %v488_v16 = vsel %vm338_vm1, %v486_v63, %v487_v61  ;;  %v2982_v18 = vrot.slane %v2083_v10, 1  ;;  %v2097_v19 = vadd.f32 %v485_v5, %v475_v4  ;;  %v490_v20 = vrot.slane %v2064_v59, 2 }
  0x7c   : > { %v2979_v24 = vrot.slane %v2083_v10, 2  ;;  %v610_v25 = vrot.slane %v593_v11, 1  ;;  %v2104_v27 = vadd.f32 %v487_v61, %v478_v6  ;;  %v480_v28 = vadd.f32 %v462_v9, %v2064_v59 }
  0x7d   : > { %v489_v29 = vrot.slane %v2071_v3, 2  ;;  %v638_v30 = vrot.slane %v593_v11, 2  ;;  %v2108_v33 = vadd.f32 %v488_v16, %v477_v13  ;;  %v463_v34 = vsel %vm309_vm0, %v461_v14, %v462_v9 }
  0x7e   : > { %379 = vrot.lane.b32.xlu1 %v2056_v54, %s1741_s21  ;;  %387 = vrot.lane.b32.xlu0 %v2058_v55, %s1741_s21  ;;  %3016 = vst [vmem:[#allocation9_spill] sm:$0xff] %v2104_v27  ;;  %v612_v35 = vsel %vm309_vm0, %v610_v25, %v2982_v18  ;;  %v2116_v36 = vmul.f32 %v1967_v2, %v1967_v2  ;;  %v465_v37 = vrot.slane %v2101_v21, 1  ;;  %v493_v45 = vrot.slane %v2101_v21, 2 }
  0x7f   : > { %3017 = vst [vmem:[#allocation10_spill] sm:$0xff] %v2108_v33  ;;  %v629_v38 = vadd.f32 %v612_v35, %v593_v11  ;;  %v640_v42 = vsel %vm338_vm1, %v638_v30, %v2979_v24  ;;  %v595_v44 = vmul.f32 %v1983_v12, %v1983_v12  ;;  %v2133_v50 = vmul.f32 %v1977_v8, %v1977_v8 }
  0x80   : > { %v2968_v48 = vrot.slane %v2116_v36, 1  ;;  %v2963_v49 = vrot.slane %v2116_v36, 2  ;;  %v597_v56 = vmul.f32 %v2003_v26, %v2003_v26  ;;  %v2139_v57 = vadd.f32 %v490_v20, %v480_v28 }
  0x81   : > { %v2135_v51 = vadd.f32 %v640_v42, %v629_v38  ;;  %v613_v52 = vrot.slane %v595_v44, 1  ;;  %v641_v53 = vrot.slane %v595_v44, 2  ;;  %v2962_v58 = vrot.slane %v2133_v50, 1 }
  0x82   : > { %409 = vrot.lane.b32.xlu1 %v1998_v23, %s1742_s30  ;;  %407 = vrot.lane.b32.xlu0 %v2015_v32, %s1742_s30  ;;  %v2961_v60 = vrot.slane %v2133_v50, 2  ;;  %v759_v61 = vmul.f32 %v2027_v40, %v2027_v40  ;;  %v616_v5 = vrot.slane %v597_v56, 1  ;;  %v644_v6 = vrot.slane %v597_v56, 2 }
  0x83   : > { %v615_v63 = vsel %vm309_vm0, %v613_v52, %v2968_v48  ;;  %v643_v4 = vsel %vm338_vm1, %v641_v53, %v2963_v49  ;;  %v479_v9 = vadd.f32 %v463_v34, %v2071_v3  ;;  %v491_v11 = vsel %vm338_vm1, %v489_v29, %v490_v20 }
  0x84   : > { %v631_v13 = vadd.f32 %v615_v63, %v595_v44  ;;  %v775_v14 = vrot.slane %v759_v61, 1  ;;  %v618_v16 = vsel %vm309_vm0, %v616_v5, %v2962_v58  ;;  %v646_v25 = vsel %vm338_vm1, %v644_v6, %v2961_v60 }
  0x85   : > { %v2168_v28 = vmul.f32 %v2024_v39, %v2024_v39  ;;  %v803_v30 = vrot.slane %v759_v61, 2  ;;  %v464_v35 = vrot.slane %v2146_v62, 1  ;;  %v633_v20 = vadd.f32 %v618_v16, %v597_v56 }
  0x86   : > { %413 = vrot.lane.b32.xlu1 %v1996_v22, %s1742_s30  ;;  %411 = vrot.lane.b32.xlu0 %v2056_v54, %s1742_s30  ;;  %v2171_v34 = vadd.f32 %v643_v4, %v631_v13  ;;  %v761_v29 = vmul.f32 %v2044_v47, %v2044_v47  ;;  %v2179_v44 = vmul.f32 %v2041_v46, %v2041_v46  ;;  %vm1385_vm2 = vcmask 111616  }
  0x87   : > { %v2964_v38 = vrot.slane %v2168_v28, 1  ;;  %v2967_v42 = vrot.slane %v2168_v28, 2  ;;  %v763_v52 = vmul.f32 %v2071_v3, %v2071_v3  ;;  %v2187_v53 = vadd.f32 %v646_v25, %v633_v20 }
  0x88   : > { %v778_v56 = vrot.slane %v761_v29, 1  ;;  %v806_v63 = vrot.slane %v761_v29, 2  ;;  %v2191_v4 = vmul.f32 %v2064_v59, %v2064_v59  ;;  %v2965_v13 = vrot.slane %v2179_v44, 1 }
  0x89   : > { %v777_v5 = vsel %vm309_vm0, %v775_v14, %v2964_v38  ;;  %v805_v6 = vsel %vm338_vm1, %v803_v30, %v2967_v42  ;;  %v2966_v16 = vrot.slane %v2179_v44, 2  ;;  %v492_v25 = vrot.slane %v2146_v62, 2 }
  0x8a   : > { %417 = vrot.lane.b32.xlu1 %v2013_v31, %s1742_s30  ;;  %415 = vrot.lane.b32.xlu0 %v2036_v43, %s1742_s30  ;;  %v795_v20 = vadd.f32 %v777_v5, %v759_v61  ;;  %v781_v60 = vrot.slane %v763_v52, 1  ;;  %v2970_v58 = vrot.slane %v2191_v4, 1  ;;  %v780_v49 = vsel %vm309_vm0, %v778_v56, %v2965_v13 }
  0x8b   : > { %v808_v14 = vsel %vm338_vm1, %v806_v63, %v2966_v16  ;;  %v809_v38 = vrot.slane %v763_v52, 2  ;;  %v2969_v30 = vrot.slane %v2191_v4, 2  ;;  %v466_v61 = vsel %vm309_vm0, %v464_v35, %v465_v37 }
  0x8c   : > { %v2217_v5 = vadd.f32 %v805_v6, %v795_v20  ;;  %v797_v56 = vadd.f32 %v780_v49, %v761_v29  ;;  %v2219_v13 = vadd.f32 %v491_v11, %v479_v9  ;;  %v482_v63 = vadd.f32 %v465_v37, %v2101_v21 }
  0x8d   : > { %v783_v16 = vsel %vm309_vm0, %v781_v60, %v2970_v58  ;;  %v811_v42 = vsel %vm338_vm1, %v809_v38, %v2969_v30  ;;  %v765_v49 = vmul.f32 %v2146_v62, %v2146_v62  ;;  %v2236_v9 = vmul.f32 %v2101_v21, %v2101_v21 }
  0x8e   : > { %421 = vrot.lane.b32.xlu1 %v2029_v41, %s1742_s30  ;;  %419 = vrot.lane.b32.xlu0 %v2058_v55, %s1742_s30  ;;  %v2230_v48 = vadd.f32 %v808_v14, %v797_v56  ;;  %v799_v35 = vadd.f32 %v783_v16, %v763_v52  ;;  %v481_v37 = vadd.f32 %v466_v61, %v2146_v62  ;;  %vm1383_vm3 = vcmask 113664  }
  0x8f   : > { %v494_v60 = vsel %vm338_vm1, %v492_v25, %v493_v45  ;;  %v2244_v11 = vmul.f32 %v2024_v39, %v1964_v1  ;;  %v927_v29 = vmul.f32 %v2027_v40, %v1974_v7  ;;  %v784_v52 = vrot.slane %v765_v49, 1 }
  0x90   : > { %v2252_v38 = vadd.f32 %v811_v42, %v799_v35  ;;  %v2978_v6 = vrot.slane %v2236_v9, 1  ;;  %v812_v16 = vrot.slane %v765_v49, 2  ;;  %v2977_v25 = vrot.slane %v2236_v9, 2 }
  0x91   : > { %v2976_v39 = vrot.slane %v2244_v11, 1  ;;  %v2975_v20 = vrot.slane %v2244_v11, 2  ;;  %v943_v14 = vrot.slane %v927_v29, 1  ;;  %v2260_v40 = vmul.f32 %v1964_v1, %v1964_v1 }
  0x92   : > { %521 = vrot.lane.b32.xlu1 %v2089_v15, %s1741_s21  ;;  %519 = vrot.lane.b32.xlu0 %v2097_v19, %s1741_s21  ;;  %v786_v42 = vsel %vm309_vm0, %v784_v52, %v2978_v6  ;;  %v971_v61 = vrot.slane %v927_v29, 2  ;;  %v2267_v56 = vmul.f32 %v2041_v46, %v1961_v0  ;;  %v2271_v35 = vadd.f32 %v493_v45, %v482_v63 }
  0x93   : > { %v801_v30 = vadd.f32 %v786_v42, %v765_v49  ;;  %v814_v58 = vsel %vm338_vm1, %v812_v16, %v2977_v25  ;;  %v945_v1 = vsel %vm309_vm0, %v943_v14, %v2976_v39  ;;  %v2283_v0 = vadd.f32 %v494_v60, %v481_v37  ;;  %v2363_v25 = vld [vmem:[%s2326_s6 + $0x28] sm:$0xff] }
  0x94   : > { %v963_v46 = vadd.f32 %v945_v1, %v927_v29  ;;  %v973_v45 = vsel %vm338_vm1, %v971_v61, %v2975_v20  ;;  %v2974_v49 = vrot.slane %v2267_v56, 1  ;;  %v2971_v52 = vrot.slane %v2267_v56, 2 }
  0x95   : > { %v2288_v63 = vadd.f32 %v814_v58, %v801_v30  ;;  %v929_v16 = vmul.f32 %v2044_v47, %v1990_v17  ;;  %v2296_v14 = vmul.f32 %v1974_v7, %v1974_v7  ;;  %v2302_v60 = vmul.f32 %v2064_v59, %v1967_v2 }
  0x96   : > { %525 = vrot.lane.b32.xlu1 %v2104_v27, %s1741_s21  ;;  %523 = vrot.lane.b32.xlu0 %v2108_v33, %s1741_s21  ;;  %v2298_v37 = vadd.f32 %v973_v45, %v963_v46  ;;  %v931_v58 = vmul.f32 %v2071_v3, %v1983_v12  ;;  %v2308_v42 = vmul.f32 %v2101_v21, %v1977_v8  ;;  %v2329_v3 = vld [vmem:[%s2326_s6 + $0x8] sm:$0xff]  ;;  %v608_v21 = vrot.slane %v2260_v40, 1 }
  0x97   : > { %3018 = vst [vmem:[#allocation11_spill] sm:$0xff] %v2288_v63  ;;  %v946_v30 = vrot.slane %v929_v16, 1  ;;  %v974_v29 = vrot.slane %v929_v16, 2  ;;  %v933_v7 = vmul.f32 %v2146_v62, %v2003_v26  ;;  %v2973_v2 = vrot.slane %v2302_v60, 1 }
  0x98   : > { %3019 = vst [vmem:[#allocation12_spill] sm:$0xff] %v2298_v37  ;;  %v2972_v17 = vrot.slane %v2302_v60, 2  ;;  %v949_v12 = vrot.slane %v931_v58, 1  ;;  %v977_v26 = vrot.slane %v931_v58, 2  ;;  %v2981_v59 = vrot.slane %v2308_v42, 1 }
  0x99   : > { %v948_v47 = vsel %vm309_vm0, %v946_v30, %v2974_v49  ;;  %v976_v8 = vsel %vm338_vm1, %v974_v29, %v2971_v52  ;;  %v2980_v1 = vrot.slane %v2308_v42, 2  ;;  %v607_v46 = vrot.slane %v2296_v14, 1  ;;  %v293_v52 = vld [vmem:[%s2326_s6] sm:$0xff] }
  0x9a   : > { %529 = vrot.lane.b32.xlu1 %v2139_v57, %s1741_s21  ;;  %527 = vrot.lane.b32.xlu0 %v2219_v13, %s1741_s21  ;;  %v965_v62 = vadd.f32 %v948_v47, %v929_v16  ;;  %v951_v61 = vsel %vm309_vm0, %v949_v12, %v2973_v2  ;;  %v979_v30 = vsel %vm338_vm1, %v977_v26, %v2972_v17  ;;  %v952_v29 = vrot.slane %v933_v7, 1 }
  0x9b   : > { %v967_v45 = vadd.f32 %v951_v61, %v931_v58  ;;  %v980_v12 = vrot.slane %v933_v7, 2  ;;  %v2984_v47 = vrot.slane %v2329_v3, 1  ;;  %v2349_v58 = vld [vmem:[%s2326_s6 + $0x18] sm:$0xff]  ;;  %v295_v61 = vld [vmem:[%s2326_s6 + $0x10] sm:$0xff]  ;;  %v636_v26 = vrot.slane %v2260_v40, 2 }
  0x9c   : > { %v2345_v16 = vadd.f32 %v976_v8, %v965_v62  ;;  %v954_v2 = vsel %vm309_vm0, %v952_v29, %v2981_v59  ;;  %v2985_v49 = vrot.slane %v2329_v3, 2  ;;  %v1191_v62 = vrot.slane %v293_v52, 1  ;;  %v297_v29 = vld [vmem:[%s2326_s6 + $0x20] sm:$0xff] }
  0x9d   : > { %v2353_v17 = vadd.f32 %v979_v30, %v967_v45  ;;  %v969_v20 = vadd.f32 %v954_v2, %v933_v7  ;;  %v982_v8 = vsel %vm338_vm1, %v980_v12, %v2980_v1  ;;  %v1219_v39 = vrot.slane %v293_v52, 2 }
  0x9e   : > { %533 = vrot.lane.b32.xlu1 %v2271_v35, %s1741_s21  ;;  %531 = vrot.lane.b32.xlu0 %v2283_v0, %s1741_s21  ;;  %3020 = vst [vmem:[#allocation13_spill] sm:$0xff] %v2345_v16  ;;  %v609_v6 = vsel %vm309_vm0, %v607_v46, %v608_v21  ;;  %v2991_v45 = vrot.slane %v2349_v58, 1  ;;  %v1194_v24 = vrot.slane %v295_v61, 1  ;;  %v1193_v2 = vsel %vm309_vm0, %v1191_v62, %v2984_v47 }
  0x9f   : > { %3021 = vst [vmem:[#allocation14_spill] sm:$0xff] %v2353_v17  ;;  %v2373_v7 = vadd.f32 %v982_v8, %v969_v20  ;;  %v1221_v46 = vsel %vm338_vm1, %v1219_v39, %v2985_v49  ;;  %v1222_v12 = vrot.slane %v295_v61, 2  ;;  %v635_v1 = vrot.slane %v2296_v14, 2  ;;  %v2387_v20 = vld [vmem:[%s2326_s6 + $0x38] sm:$0xff]  ;;  %v299_v49 = vld [vmem:[%s2326_s6 + $0x30] sm:$0xff] }
  0xa0   : > { %v1211_v59 = vadd.f32 %v1193_v2, %v293_v52  ;;  %v1196_v18 = vsel %vm309_vm0, %v1194_v24, %v2991_v45  ;;  %v2987_v30 = vrot.slane %v2363_v25, 1  ;;  %v2989_v47 = vrot.slane %v2363_v25, 2 }
  0xa1   : > { %3022 = vst [vmem:[#allocation15_spill] sm:$0xff] %v2373_v7  ;;  %v1213_v8 = vadd.f32 %v1196_v18, %v295_v61  ;;  %v1197_v39 = vrot.slane %v297_v29, 1  ;;  %v627_v52 = vadd.f32 %v609_v6, %v2296_v14  ;;  %v1225_v24 = vrot.slane %v297_v29, 2 }
  0xa2   : > { %553 = vrot.lane.b32.xlu1 %v2089_v15, %s1742_s30  ;;  %551 = vrot.lane.b32.xlu0 %v2097_v19, %s1742_s30  ;;  %v2396_v2 = vadd.f32 %v1221_v46, %v1211_v59  ;;  %v2990_v61 = vrot.slane %v2387_v20, 1  ;;  %v637_v6 = vsel %vm338_vm1, %v635_v1, %v636_v26  ;;  %v1228_v46 = vrot.slane %v299_v49, 2 }
  0xa3   : > { %v1227_v59 = vsel %vm338_vm1, %v1225_v24, %v2989_v47  ;;  %v2427_v1 = vadd.f32 %v637_v6, %v627_v52  ;;  %v3029_v24 = vrot.slane %v2083_v10, 2  ;;  %v3030_v52 = vrot.slane %v2116_v36, 1 }
  0xa4   : > { %3024 = vst [vmem:[#allocation16_spill] sm:$0xff] %v2396_v2 }
  0xa6   : > { %557 = vrot.lane.b32.xlu1 %v2104_v27, %s1742_s30  ;;  %555 = vrot.lane.b32.xlu0 %v2108_v33, %s1742_s30  ;;  %v3023_v33 = vrot.slane %v2349_v58, 2  ;;  %v628_v27 = vadd.f32 %v608_v21, %v2260_v40  ;;  %v2988_v40 = vrot.slane %v2387_v20, 2  ;;  %v1200_v21 = vrot.slane %v299_v49, 1 }
  0xa8   : > { %v1224_v62 = vsel %vm338_vm1, %v1222_v12, %v3023_v33  ;;  %v1199_v33 = vsel %vm309_vm0, %v1197_v39, %v2987_v30  ;;  %v2413_v12 = vadd.f32 %v636_v26, %v628_v27  ;;  %v1202_v30 = vsel %vm309_vm0, %v1200_v21, %v2990_v61 }
  0xa9   : > { %v2402_v18 = vadd.f32 %v1224_v62, %v1213_v8  ;;  %v1215_v14 = vadd.f32 %v1199_v33, %v297_v29  ;;  %v3026_v8 = vrot.slane %v2083_v10, 1  ;;  %v1217_v27 = vadd.f32 %v1202_v30, %v299_v49 }
  0xaa   : > { %561 = vrot.lane.b32.xlu1 %v2139_v57, %s1742_s30  ;;  %559 = vrot.lane.b32.xlu0 %v2219_v13, %s1742_s30  ;;  %v1230_v26 = vsel %vm338_vm1, %v1228_v46, %v2988_v40  ;;  %v632_v49 = vadd.f32 %v3030_v52, %v2116_v36  ;;  %v3031_v30 = vrot.slane %v2116_v36, 2  ;;  %v3034_v36 = vrot.slane %v2168_v28, 1 }
  0xab   : > { %3025 = vst [vmem:[#allocation17_spill] sm:$0xff] %v2402_v18  ;;  %v630_v62 = vadd.f32 %v3026_v8, %v2083_v10  ;;  %v2418_v39 = vadd.f32 %v1227_v59, %v1215_v14  ;;  %v2432_v29 = vadd.f32 %v1230_v26, %v1217_v27  ;;  %v3032_v14 = vrot.slane %v2133_v50, 1 }
  0xac   : > { %v2451_v6 = vadd.f32 %v3031_v30, %v632_v49  ;;  %v3033_v59 = vrot.slane %v2133_v50, 2  ;;  %v3035_v46 = vrot.slane %v2168_v28, 2  ;;  %v3037_v26 = vrot.slane %v2179_v44, 2 }
  0xad   : > { %3027 = vst [vmem:[#allocation18_spill] sm:$0xff] %v2418_v39  ;;  %3028 = vst [vmem:[#allocation19_spill] sm:$0xff] %v2432_v29  ;;  %v2440_v33 = vadd.f32 %v3029_v24, %v630_v62  ;;  %v634_v10 = vadd.f32 %v3032_v14, %v2133_v50  ;;  %v796_v50 = vadd.f32 %v3034_v36, %v2168_v28  ;;  %v3036_v62 = vrot.slane %v2179_v44, 1 }
  0xae   : > { %565 = vrot.lane.b32.xlu1 %v2271_v35, %s1742_s30  ;;  %563 = vrot.lane.b32.xlu0 %v2283_v0, %s1742_s30  ;;  %v3038_v52 = vrot.slane %v2191_v4, 1  ;;  %v3039_v49 = vrot.slane %v2191_v4, 2 }
  0xaf   : > { %v2462_v21 = vadd.f32 %v3033_v59, %v634_v10  ;;  %v2489_v8 = vadd.f32 %v3035_v46, %v796_v50  ;;  %v798_v27 = vadd.f32 %v3036_v62, %v2179_v44  ;;  %v3040_v44 = vrot.slane %v2236_v9, 1 }
  0xb0   : > { %v800_v28 = vadd.f32 %v3038_v52, %v2191_v4  ;;  %v3041_v4 = vrot.slane %v2236_v9, 2  ;;  %v3043_v52 = vrot.slane %v2244_v11, 2 }
  0xb1   : > { %v2500_v24 = vadd.f32 %v3037_v26, %v798_v27  ;;  %v802_v14 = vadd.f32 %v3040_v44, %v2236_v9  ;;  %v3042_v9 = vrot.slane %v2244_v11, 1 }
  0xb2   : > { %673 = vrot.lane.b32.xlu1 %v2413_v12, %s1741_s21  ;;  %671 = vrot.lane.b32.xlu0 %v2427_v1, %s1741_s21  ;;  %v2511_v30 = vadd.f32 %v3039_v49, %v800_v28  ;;  %v3044_v49 = vrot.slane %v2267_v56, 1 }
  0xb3   : > { %v2526_v10 = vadd.f32 %v3041_v4, %v802_v14  ;;  %v964_v62 = vadd.f32 %v3042_v9, %v2244_v11  ;;  %v3045_v9 = vrot.slane %v2267_v56, 2  ;;  %v3047_v11 = vrot.slane %v2302_v60, 1 }
  0xb4   : > { %v966_v44 = vadd.f32 %v3044_v49, %v2267_v56  ;;  %v3048_v56 = vrot.slane %v2302_v60, 2 }
  0xb5   : > { %v2549_v28 = vadd.f32 %v3043_v52, %v964_v62  ;;  %v968_v62 = vadd.f32 %v3047_v11, %v2302_v60 }
  0xb6   : > { %677 = vrot.lane.b32.xlu1 %v2440_v33, %s1741_s21  ;;  %675 = vrot.lane.b32.xlu0 %v2135_v51, %s1741_s21  ;;  %v2560_v40 = vadd.f32 %v3045_v9, %v966_v44 }
  0xb7   : > { %v2573_v44 = vadd.f32 %v3048_v56, %v968_v62 }
  0xb8   : > { %3046 = vst [vmem:[#allocation20_spill] sm:$0xff] %v2560_v40 }
  0xb9   : > { %3049 = vst [vmem:[#allocation21_spill] sm:$0xff] %v2573_v44 }
  0xba   : > { %681 = vrot.lane.b32.xlu1 %v2451_v6, %s1741_s21  ;;  %679 = vrot.lane.b32.xlu0 %v2171_v34, %s1741_s21 }
  0xbe   : > { %685 = vrot.lane.b32.xlu1 %v2462_v21, %s1741_s21  ;;  %683 = vrot.lane.b32.xlu0 %v2187_v53, %s1741_s21 }
  0xc2   : > { %705 = vrot.lane.b32.xlu1 %v2413_v12, %s1742_s30  ;;  %703 = vrot.lane.b32.xlu0 %v2427_v1, %s1742_s30 }
  0xc6   : > { %709 = vrot.lane.b32.xlu1 %v2440_v33, %s1742_s30  ;;  %707 = vrot.lane.b32.xlu0 %v2135_v51, %s1742_s30 }
  0xca   : > { %713 = vrot.lane.b32.xlu1 %v2451_v6, %s1742_s30  ;;  %711 = vrot.lane.b32.xlu0 %v2171_v34, %s1742_s30 }
  0xce   : > { %839 = vrot.lane.b32.xlu1 %v2217_v5, %s1741_s21  ;;  %715 = vrot.lane.b32.xlu0 %v2187_v53, %s1742_s30 }
  0xd2   : > { %843 = vrot.lane.b32.xlu1 %v2230_v48, %s1741_s21  ;;  %841 = vrot.lane.b32.xlu0 %v2489_v8, %s1741_s21 }
  0xd6   : > { %847 = vrot.lane.b32.xlu1 %v2252_v38, %s1741_s21  ;;  %845 = vrot.lane.b32.xlu0 %v2500_v24, %s1741_s21 }
  0xda   : > { %871 = vrot.lane.b32.xlu1 %v2217_v5, %s1742_s30  ;;  %849 = vrot.lane.b32.xlu0 %v2511_v30, %s1741_s21 }
  0xde   : > { %851 = vrot.lane.b32.xlu1 %v2288_v63, %s1741_s21  ;;  %873 = vrot.lane.b32.xlu0 %v2489_v8, %s1742_s30 }
  0xe2   : > { %875 = vrot.lane.b32.xlu1 %v2230_v48, %s1742_s30  ;;  %853 = vrot.lane.b32.xlu0 %v2526_v10, %s1741_s21 }
  0xe4   : > { %v382_v59 = vpop.permute.xlu1 %381  ;;  %v378_v36 = vpop.permute.xlu0 %377 }
  0xe5   : > { %v400_v52 = vadd.f32 %v378_v36, %v1998_v23  ;;  %v402_v9 = vadd.f32 %v382_v59, %v1996_v22 }
  0xe6   : > { %879 = vrot.lane.b32.xlu1 %v2252_v38, %s1742_s30  ;;  %877 = vrot.lane.b32.xlu0 %v2500_v24, %s1742_s30 }
  0xe8   : > { %v386_v50 = vpop.permute.xlu1 %385  ;;  %v376_v46 = vpop.permute.xlu0 %375 }
  0xe9   : > { %v399_v49 = vadd.f32 %v376_v46, %v2015_v32 }
  0xea   : > { %717 = vrot.lane.b32.xlu1 %v2462_v21, %s1742_s30  ;;  %881 = vrot.lane.b32.xlu0 %v2511_v30, %s1742_s30 }
  0xec   : > { %v390_v27 = vpop.permute.xlu1 %389  ;;  %v384_v26 = vpop.permute.xlu0 %383 }
  0xed   : > { %v403_v22 = vadd.f32 %v384_v26, %v2036_v43  ;;  %v406_v56 = vadd.f32 %v390_v27, %v2029_v41  ;;  %v3053_v27 = vrot.slane %v2329_v3, 1 }
  0xee   : > { %885 = vrot.lane.b32.xlu1 %v2526_v10, %s1742_s30  ;;  %883 = vrot.lane.b32.xlu0 %v2288_v63, %s1742_s30 }
  0xf0   : > { %v380_v14 = vpop.permute.xlu1 %379  ;;  %v388_v4 = vpop.permute.xlu0 %387 }
  0xf1   : > { %v401_v23 = vadd.f32 %v380_v14, %v2056_v54 }
  0xf2   : > { %1009 = vrot.lane.b32.xlu1 %v2549_v28, %s1741_s21  ;;  %1007 = vrot.lane.b32.xlu0 %v2298_v37, %s1741_s21 }
  0xf4   : > { %v410_v47 = vpop.permute.xlu1 %409  ;;  %v408_v61 = vpop.permute.xlu0 %407 }
  0xf5   : > { %v432_v45 = vadd.f32 %v410_v47, %v400_v52  ;;  %v431_v63 = vadd.f32 %v408_v61, %v399_v49  ;;  %v3050_v47 = vrot.slane %v2308_v42, 1  ;;  %v404_v61 = vadd.f32 %v386_v50, %v2013_v31 }
  0xf6   : > { %1013 = vrot.lane.b32.xlu1 %v2560_v40, %s1741_s21  ;;  %1011 = vrot.lane.b32.xlu0 %v2345_v16, %s1741_s21  ;;  %v3051_v52 = vrot.slane %v2308_v42, 2  ;;  %v405_v31 = vadd.f32 %v388_v4, %v2058_v55  ;;  %v1212_v4 = vadd.f32 %v3053_v27, %v2329_v3 }
  0xf7   : > { %v970_v60 = vadd.f32 %v3050_v47, %v2308_v42  ;;  %v3054_v47 = vrot.slane %v2329_v3, 2  ;;  %v439_v3 = vmul.f32 0.11111111, %v431_v63 }
  0xf8   : > { %v414_v36 = vpop.permute.xlu1 %413  ;;  %v412_v32 = vpop.permute.xlu0 %411 }
  0xf9   : > { %v434_v46 = vadd.f32 %v414_v36, %v402_v9  ;;  %v433_v11 = vadd.f32 %v412_v32, %v401_v23  ;;  %v2592_v49 = vadd.f32 %v3051_v52, %v970_v60  ;;  %v2621_v60 = vadd.f32 %v3054_v47, %v1212_v4 }
  0xfa   : > { %1017 = vrot.lane.b32.xlu1 %v2573_v44, %s1741_s21  ;;  %1015 = vrot.lane.b32.xlu0 %v2353_v17, %s1741_s21  ;;  %v3057_v52 = vrot.slane %v2363_v25, 1  ;;  %v3059_v4 = vrot.slane %v2349_v58, 2 }
  0xfb   : > { %3052 = vst [vmem:[#allocation22_spill] sm:$0xff] %v2592_v49  ;;  %3055 = vst [vmem:[#allocation23_spill] sm:$0xff] %v2621_v60  ;;  %v2636_v27 = vmul.f32 0.11111111, %v434_v46 }
  0xfc   : > { %v418_v59 = vpop.permute.xlu1 %417  ;;  %v416_v54 = vpop.permute.xlu0 %415 }
  0xfd   : > { %v436_v14 = vadd.f32 %v418_v59, %v404_v61  ;;  %v435_v62 = vadd.f32 %v416_v54, %v403_v22  ;;  %v3056_v61 = vrot.slane %v2349_v58, 1 }
  0xfe   : > { %1041 = vrot.lane.b32.xlu1 %v2549_v28, %s1742_s30  ;;  %1039 = vrot.lane.b32.xlu0 %v2298_v37, %s1742_s30 }
  0xff   : > { %v1214_v22 = vadd.f32 %v3056_v61, %v2349_v58 }
 0x100   : > { %v422_v50 = vpop.permute.xlu1 %421  ;;  %v420_v43 = vpop.permute.xlu0 %419 }
 0x101   : > { %v2596_v26 = vadd.f32 %v422_v50, %v406_v56  ;;  %v2598_v9 = vadd.f32 %v420_v43, %v405_v31  ;;  %v1216_v56 = vadd.f32 %v3057_v52, %v2363_v25  ;;  %v3058_v31 = vrot.slane %v2387_v20, 1 }
 0x102   : > { %1021 = vrot.lane.b32.xlu1 %v2592_v49, %s1741_s21  ;;  %1019 = vrot.lane.b32.xlu0 %v2373_v7, %s1741_s21  ;;  %v440_v43 = vmul.f32 0.11111111, %v432_v45  ;;  %v2644_v47 = vadd.f32 %v3059_v4, %v1214_v22  ;;  %v2650_v45 = vmul.f32 0.11111111, %v436_v14  ;;  %v1095_v22 = vmul.f32 2.0, %v439_v3 }
 0x103   : > { %v1218_v50 = vadd.f32 %v3058_v31, %v2387_v20  ;;  %v3061_v31 = vrot.slane %v2363_v25, 2  ;;  %v2669_v14 = vmul.f32 %v439_v3, %v439_v3 }
 0x104   : > { %v522_v23 = vpop.permute.xlu1 %521  ;;  %v520_v42 = vpop.permute.xlu0 %519  ;;  %3060 = vst [vmem:[#allocation24_spill] sm:$0xff] %v2644_v47  ;;  %v1096_v58 = vmul.f32 2.0, %v440_v43  ;;  %v2667_v25 = vmul.f32 %v440_v43, %v440_v43 }
 0x105   : > { %v544_v61 = vadd.f32 %v522_v23, %v2089_v15  ;;  %v543_v52 = vadd.f32 %v520_v42, %v2097_v19  ;;  %v1098_v19 = vmul.f32 2.0, %v2636_v27  ;;  %v3066_v23 = vld [vmem:[#allocation10_spill] sm:$0xff] }
 0x106   : > { %1045 = vrot.lane.b32.xlu1 %v2560_v40, %s1742_s30  ;;  %1043 = vrot.lane.b32.xlu0 %v2345_v16, %s1742_s30 }
 0x108   : > { %v526_v41 = vpop.permute.xlu1 %525  ;;  %v524_v55 = vpop.permute.xlu0 %523 }
 0x109   : > { %v545_v42 = vadd.f32 %v524_v55, %v3066_v23 }
 0x10a   : > { %1049 = vrot.lane.b32.xlu1 %v2573_v44, %s1742_s30  ;;  %1047 = vrot.lane.b32.xlu0 %v2353_v17, %s1742_s30  ;;  %v3063_v17 = vrot.slane %v2387_v20, 2 }
 0x10c   : > { %v530_v36 = vpop.permute.xlu1 %529  ;;  %v528_v32 = vpop.permute.xlu0 %527  ;;  %v2658_v44 = vadd.f32 %v3063_v17, %v1218_v50  ;;  %v3065_v17 = vld [vmem:[#allocation9_spill] sm:$0xff] }
 0x10d   : > { %v546_v20 = vadd.f32 %v526_v41, %v3065_v17 }
 0x10e   : > { %1053 = vrot.lane.b32.xlu1 %v2592_v49, %s1742_s30  ;;  %1051 = vrot.lane.b32.xlu0 %v2373_v7, %s1742_s30  ;;  %v2648_v7 = vmul.f32 0.11111111, %v433_v11  ;;  %v2654_v49 = vadd.f32 %v3061_v31, %v1216_v56  ;;  %3064 = vst [vmem:[#allocation26_spill] sm:$0xff] %v2658_v44  ;;  %v2661_v11 = vmul.f32 0.11111111, %v435_v62  ;;  %v1100_v62 = vmul.f32 2.0, %v2650_v45 }
 0x110   : > { %v2626_v59 = vpop.permute.xlu1 %533  ;;  %v2628_v54 = vpop.permute.xlu0 %531  ;;  %3062 = vst [vmem:[#allocation25_spill] sm:$0xff] %v2654_v49  ;;  %v2681_v31 = vmul.f32 %v2648_v7, %v2648_v7 }
 0x112   : > { %1257 = vrot.lane.b32.xlu1 %v2621_v60, %s1741_s21  ;;  %1255 = vrot.lane.b32.xlu0 %v2396_v2, %s1741_s21 }
 0x114   : > { %v554_v63 = vpop.permute.xlu1 %553  ;;  %v552_v46 = vpop.permute.xlu0 %551 }
 0x115   : > { %v576_v4 = vadd.f32 %v554_v63, %v544_v61  ;;  %v575_v15 = vadd.f32 %v552_v46, %v543_v52  ;;  %v1097_v61 = vmul.f32 2.0, %v2648_v7  ;;  %v2677_v46 = vmul.f32 %v2636_v27, %v2636_v27 }
 0x116   : > { %1261 = vrot.lane.b32.xlu1 %v2644_v47, %s1741_s21  ;;  %1259 = vrot.lane.b32.xlu0 %v2402_v18, %s1741_s21 }
 0x117   : > { %v584_v56 = vmul.f32 0.11111111, %v576_v4  ;;  %v583_v50 = vmul.f32 0.11111111, %v575_v15  ;;  %v1099_v15 = vmul.f32 2.0, %v2661_v11 }
 0x118   : > { %v558_v52 = vpop.permute.xlu1 %557  ;;  %v556_v63 = vpop.permute.xlu0 %555 }
 0x119   : > { %v2683_v16 = vmul.f32 %v1096_v58, %v584_v56  ;;  %v2685_v41 = vmul.f32 %v1095_v22, %v583_v50  ;;  %v578_v55 = vadd.f32 %v558_v52, %v546_v20  ;;  %v577_v4 = vadd.f32 %v556_v63, %v545_v42 }
 0x11a   : > { %1265 = vrot.lane.b32.xlu1 %v2654_v49, %s1741_s21  ;;  %1263 = vrot.lane.b32.xlu0 %v2418_v39, %s1741_s21  ;;  %v2692_v17 = vmul.f32 %v583_v50, %v583_v50  ;;  %v2694_v23 = vmul.f32 %v584_v56, %v584_v56  ;;  %v2696_v40 = vmul.f32 %v584_v56, %v440_v43  ;;  %v446_v52 = vmul.f32 0.11111111, %v2596_v26 }
 0x11b   : > { %3067 = vst [vmem:[#allocation9_spill] sm:$0xff] %v2683_v16  ;;  %3068 = vst [vmem:[#allocation10_spill] sm:$0xff] %v2685_v41  ;;  %v548_v58 = vadd.f32 %v530_v36, %v2139_v57  ;;  %v547_v22 = vadd.f32 %v528_v32, %v2219_v13  ;;  %v586_v20 = vmul.f32 0.11111111, %v578_v55  ;;  %v2700_v42 = vmul.f32 %v583_v50, %v439_v3 }
 0x11c   : > { %v585_v63 = vmul.f32 0.11111111, %v577_v4  ;;  %v562_v41 = vpop.permute.xlu1 %561  ;;  %v560_v16 = vpop.permute.xlu0 %559  ;;  %v2705_v37 = vadd.f32 %v2692_v17, %v2669_v14  ;;  %v2709_v43 = vadd.f32 %v2694_v23, %v2667_v25  ;;  %v445_v32 = vmul.f32 0.11111111, %v2598_v9 }
 0x11d   : > { %3069 = vst [vmem:[#allocation27_spill] sm:$0xff] %v2700_v42  ;;  %v2711_v56 = vmul.f32 %v1098_v19, %v586_v20  ;;  %v580_v57 = vadd.f32 %v562_v41, %v548_v58  ;;  %v579_v13 = vadd.f32 %v560_v16, %v547_v22  ;;  %v2713_v36 = vmul.f32 %v586_v20, %v586_v20 }
 0x11e   : > { %v550_v26 = vadd.f32 %v2626_v59, %v2271_v35  ;;  %v2718_v3 = vmul.f32 %v1097_v61, %v585_v63  ;;  %1289 = vrot.lane.b32.xlu1 %v2621_v60, %s1742_s30  ;;  %1287 = vrot.lane.b32.xlu0 %v2396_v2, %s1742_s30  ;;  %v2724_v50 = vmul.f32 %v585_v63, %v585_v63 }
 0x11f   : > { %3070 = vst [vmem:[#allocation28_spill] sm:$0xff] %v2711_v56  ;;  %v549_v16 = vadd.f32 %v2628_v54, %v2283_v0  ;;  %v588_v19 = vmul.f32 0.11111111, %v580_v57  ;;  %v587_v41 = vmul.f32 0.11111111, %v579_v13  ;;  %v2730_v9 = vadd.f32 %v2713_v36, %v2677_v46 }
 0x120   : > { %3071 = vst [vmem:[#allocation29_spill] sm:$0xff] %v2718_v3  ;;  %v566_v35 = vpop.permute.xlu1 %565  ;;  %v564_v59 = vpop.permute.xlu0 %563  ;;  %v2734_v61 = vmul.f32 %v2650_v45, %v2650_v45  ;;  %v2738_v55 = vadd.f32 %v2724_v50, %v2681_v31  ;;  %v2741_v4 = vmul.f32 %v586_v20, %v2636_v27  ;;  %v2744_v0 = vmul.f32 %v585_v63, %v2648_v7 }
 0x121   : > { %v2746_v54 = vmul.f32 %v1100_v62, %v588_v19  ;;  %v2748_v58 = vmul.f32 %v1099_v15, %v587_v41  ;;  %v582_v22 = vadd.f32 %v566_v35, %v550_v26  ;;  %v581_v57 = vadd.f32 %v564_v59, %v549_v16 }
 0x122   : > { %3072 = vst [vmem:[#allocation30_spill] sm:$0xff] %v2741_v4  ;;  %3073 = vst [vmem:[#allocation31_spill] sm:$0xff] %v2744_v0  ;;  %1269 = vrot.lane.b32.xlu1 %v2658_v44, %s1741_s21  ;;  %1267 = vrot.lane.b32.xlu0 %v2432_v29, %s1741_s21  ;;  %v2756_v13 = vmul.f32 %v2661_v11, %v2661_v11  ;;  %v2758_v27 = vmul.f32 %v587_v41, %v587_v41  ;;  %v1102_v62 = vmul.f32 2.0, %v446_v52 }
 0x123   : > { %3074 = vst [vmem:[#allocation32_spill] sm:$0xff] %v2746_v54  ;;  %3075 = vst [vmem:[#allocation33_spill] sm:$0xff] %v2748_v58  ;;  %v2760_v7 = vmul.f32 %v588_v19, %v588_v19  ;;  %v1101_v20 = vmul.f32 2.0, %v445_v32  ;;  %v590_v15 = vmul.f32 0.11111111, %v582_v22  ;;  %v2763_v63 = vmul.f32 %v588_v19, %v2650_v45 }
 0x124   : > { %v589_v26 = vmul.f32 0.11111111, %v581_v57  ;;  %v674_v16 = vpop.permute.xlu1 %673  ;;  %v672_v35 = vpop.permute.xlu0 %671  ;;  %v2767_v59 = vadd.f32 %v2758_v27, %v2756_v13  ;;  %v2774_v60 = vmul.f32 %v587_v41, %v2661_v11  ;;  %v2778_v22 = vmul.f32 %v446_v52, %v446_v52 }
 0x125   : > { %3076 = vst [vmem:[#allocation34_spill] sm:$0xff] %v2763_v63  ;;  %v2771_v2 = vadd.f32 %v2760_v7, %v2734_v61  ;;  %v2776_v58 = vmul.f32 %v1102_v62, %v590_v15  ;;  %v2780_v45 = vmul.f32 %v590_v15, %v590_v15  ;;  %v2788_v57 = vmul.f32 %v445_v32, %v445_v32 }
 0x126   : > { %3077 = vst [vmem:[#allocation35_spill] sm:$0xff] %v2774_v60  ;;  %v2782_v19 = vmul.f32 %v1101_v20, %v589_v26  ;;  %1293 = vrot.lane.b32.xlu1 %v2644_v47, %s1742_s30  ;;  %1291 = vrot.lane.b32.xlu0 %v2402_v18, %s1742_s30  ;;  %v2790_v54 = vmul.f32 %v589_v26, %v589_v26 }
 0x127   : > { %3078 = vst [vmem:[#allocation36_spill] sm:$0xff] %v2776_v58  ;;  %v2794_v11 = vadd.f32 %v2780_v45, %v2778_v22  ;;  %v2796_v41 = vmul.f32 %v590_v15, %v446_v52  ;;  %v2798_v62 = vmul.f32 %v589_v26, %v445_v32  ;;  %v696_v15 = vadd.f32 %v674_v16, %v2413_v12 }
 0x128   : > { %3079 = vst [vmem:[#allocation37_spill] sm:$0xff] %v2782_v19  ;;  %v678_v20 = vpop.permute.xlu1 %677  ;;  %v676_v19 = vpop.permute.xlu0 %675  ;;  %v2802_v47 = vadd.f32 %v2790_v54, %v2788_v57  ;;  %v695_v26 = vadd.f32 %v672_v35, %v2427_v1 }
 0x129   : > { %3080 = vst [vmem:[#allocation38_spill] sm:$0xff] %v2796_v41  ;;  %3081 = vst [vmem:[#allocation39_spill] sm:$0xff] %v2798_v62  ;;  %v697_v63 = vadd.f32 %v676_v19, %v2135_v51 }
 0x12a   : > { %1297 = vrot.lane.b32.xlu1 %v2654_v49, %s1742_s30  ;;  %1295 = vrot.lane.b32.xlu0 %v2418_v39, %s1742_s30  ;;  %v698_v39 = vadd.f32 %v678_v20, %v2440_v33 }
 0x12c   : > { %v682_v18 = vpop.permute.xlu1 %681  ;;  %v680_v58 = vpop.permute.xlu0 %679 }
 0x12d   : > { %v700_v1 = vadd.f32 %v682_v18, %v2451_v6  ;;  %v699_v16 = vadd.f32 %v680_v58, %v2171_v34 }
 0x12e   : > { %1301 = vrot.lane.b32.xlu1 %v2658_v44, %s1742_s30  ;;  %1299 = vrot.lane.b32.xlu0 %v2432_v29, %s1742_s30 }
 0x130   : > { %v2812_v52 = vpop.permute.xlu1 %685  ;;  %v684_v32 = vpop.permute.xlu0 %683 }
 0x134   : > { %v706_v62 = vpop.permute.xlu1 %705  ;;  %v704_v49 = vpop.permute.xlu0 %703 }
 0x135   : > { %v728_v41 = vadd.f32 %v706_v62, %v696_v15  ;;  %v727_v60 = vadd.f32 %v704_v49, %v695_v26 }
 0x137   : > { %v736_v3 = vmul.f32 0.11111111, %v728_v41  ;;  %v735_v44 = vmul.f32 0.11111111, %v727_v60 }
 0x138   : > { %v710_v56 = vpop.permute.xlu1 %709  ;;  %v708_v0 = vpop.permute.xlu0 %707 }
 0x139   : > { %v752_v29 = vsub.f32 %v736_v3, %v2667_v25  ;;  %v751_v4 = vsub.f32 %v735_v44, %v2669_v14  ;;  %v730_v42 = vadd.f32 %v710_v56, %v698_v39  ;;  %v729_v12 = vadd.f32 %v708_v0, %v697_v63 }
 0x13a   : > { %v701_v44 = vadd.f32 %v684_v32, %v2187_v53 }
 0x13b   : > { %v2822_v35 = vmul.f32 0.11111111, %v730_v42  ;;  %v737_v49 = vmul.f32 0.11111111, %v729_v12 }
 0x13c   : > { %v714_v33 = vpop.permute.xlu1 %713  ;;  %v712_v62 = vpop.permute.xlu0 %711 }
 0x13d   : > { %v754_v51 = vsub.f32 %v2822_v35, %v2677_v46  ;;  %v753_v60 = vsub.f32 %v737_v49, %v2681_v31  ;;  %v732_v19 = vadd.f32 %v714_v33, %v700_v1  ;;  %v731_v25 = vadd.f32 %v712_v62, %v699_v16 }
 0x13f   : > { %v2828_v39 = vmul.f32 0.11111111, %v732_v19  ;;  %v739_v14 = vmul.f32 0.11111111, %v731_v25 }
 0x140   : > { %v840_v18 = vpop.permute.xlu1 %839  ;;  %v716_v6 = vpop.permute.xlu0 %715 }
 0x141   : > { %v756_v34 = vsub.f32 %v2828_v39, %v2734_v61  ;;  %v755_v42 = vsub.f32 %v739_v14, %v2756_v13  ;;  %v733_v56 = vadd.f32 %v716_v6, %v701_v44  ;;  %v863_v41 = vadd.f32 %v840_v18, %v2217_v5 }
 0x142   : > { %v1151_v14 = vadd.f32 0.0001, %v2705_v37  ;;  %v1158_v61 = vadd.f32 0.0001, %v2794_v11 }
 0x143   : > { %v2833_v3 = vmul.f32 0.11111111, %v733_v56 }
 0x144   : > { %v844_v0 = vpop.permute.xlu1 %843  ;;  %v842_v58 = vpop.permute.xlu0 %841 }
 0x145   : > { %v757_v31 = vsub.f32 %v2833_v3, %v2788_v57  ;;  %v864_v26 = vadd.f32 %v842_v58, %v2489_v8  ;;  %v865_v33 = vadd.f32 %v844_v0, %v2230_v48 }
 0x148   : > { %v848_v63 = vpop.permute.xlu1 %847  ;;  %v846_v53 = vpop.permute.xlu0 %845 }
 0x149   : > { %v867_v8 = vadd.f32 %v848_v63, %v2252_v38 }
 0x14c   : > { %v872_v20 = vpop.permute.xlu1 %871  ;;  %v850_v32 = vpop.permute.xlu0 %849 }
 0x14d   : > { %v895_v15 = vadd.f32 %v872_v20, %v863_v41 }
 0x14f   : > { %v903_v12 = vmul.f32 0.11111111, %v895_v15 }
 0x150   : > { %v852_v1 = vpop.permute.xlu1 %851  ;;  %v874_v13 = vpop.permute.xlu0 %873 }
 0x151   : > { %v919_v16 = vsub.f32 %v903_v12, %v2692_v17  ;;  %v896_v49 = vadd.f32 %v874_v13, %v864_v26  ;;  %v866_v17 = vadd.f32 %v846_v53, %v2500_v24  ;;  %v1153_v53 = vadd.f32 0.0001, %v2738_v55 }
 0x153   : > { %v1159_v62 = vadd.f32 %v919_v16, %v751_v4  ;;  %v904_v19 = vmul.f32 0.11111111, %v896_v49  ;;  %v1152_v4 = vadd.f32 0.0001, %v2709_v43 }
 0x154   : > { %v876_v25 = vpop.permute.xlu1 %875  ;;  %v854_v44 = vpop.permute.xlu0 %853 }
 0x155   : > { %v1167_v5 = vadd.f32 0.0009, %v1159_v62  ;;  %v920_v18 = vsub.f32 %v904_v19, %v2694_v23  ;;  %v897_v6 = vadd.f32 %v876_v25, %v865_v33  ;;  %v702_v23 = vadd.f32 %v2812_v52, %v2462_v21  ;;  %v3082_v25 = vld [vmem:[#allocation11_spill] sm:$0xff] }
 0x156   : > { %v870_v21 = vadd.f32 %v854_v44, %v2526_v10 }
 0x157   : > { %v2844_v56 = vmul.f32 %v1167_v5, %v1151_v14  ;;  %v1160_v58 = vadd.f32 %v920_v18, %v752_v29  ;;  %v905_v41 = vmul.f32 0.11111111, %v897_v6  ;;  %v868_v29 = vadd.f32 %v850_v32, %v2511_v30 }
 0x158   : > { %v880_v20 = vpop.permute.xlu1 %879  ;;  %v878_v48 = vpop.permute.xlu0 %877  ;;  %v869_v14 = vadd.f32 %v852_v1, %v3082_v25  ;;  %v3088_v25 = vld [vmem:[#allocation10_spill] sm:$0xff] }
 0x159   : > { %v1168_v0 = vadd.f32 0.0009, %v1160_v58  ;;  %v921_v15 = vsub.f32 %v905_v41, %v2724_v50  ;;  %v899_v37 = vadd.f32 %v880_v20, %v867_v8  ;;  %v898_v26 = vadd.f32 %v878_v48, %v866_v17 }
 0x15a   : > { %v1154_v8 = vadd.f32 0.0001, %v2730_v9  ;;  %1590 = vrcp.f32 %v2844_v56 }
 0x15b   : > { %v1176_v12 = vmul.f32 %v1168_v0, %v1152_v4  ;;  %v1161_v38 = vadd.f32 %v921_v15, %v753_v60  ;;  %v907_v63 = vmul.f32 0.11111111, %v899_v37  ;;  %v906_v13 = vmul.f32 0.11111111, %v898_v26 }
 0x15c   : > { %v718_v16 = vpop.permute.xlu1 %717  ;;  %v882_v24 = vpop.permute.xlu0 %881 }
 0x15d   : > { %v1169_v49 = vadd.f32 0.0009, %v1161_v38  ;;  %v923_v43 = vsub.f32 %v907_v63, %v2758_v27  ;;  %v734_v33 = vadd.f32 %v718_v16, %v702_v23  ;;  %v922_v50 = vsub.f32 %v906_v13, %v2713_v36  ;;  %v3083_v38 = vld [vmem:[#allocation12_spill] sm:$0xff] }
 0x15e   : > { %v900_v62 = vadd.f32 %v882_v24, %v868_v29  ;;  %v1155_v27 = vadd.f32 0.0001, %v2767_v59  ;;  %1592 = vrcp.f32 %v1176_v12 }
 0x15f   : > { %v1177_v19 = vmul.f32 %v1169_v49, %v1153_v53  ;;  %v1163_v52 = vadd.f32 %v923_v43, %v755_v42  ;;  %v742_v60 = vmul.f32 0.11111111, %v734_v33  ;;  %v1162_v30 = vadd.f32 %v922_v50, %v754_v51  ;;  %v3084_v53 = vld [vmem:[#allocation27_spill] sm:$0xff]  ;;  %v3085_v43 = vld [vmem:[#allocation20_spill] sm:$0xff] }
 0x160   : > { %v908_v32 = vmul.f32 0.11111111, %v900_v62  ;;  %v886_v55 = vpop.permute.xlu1 %885  ;;  %v884_v5 = vpop.permute.xlu0 %883 }
 0x161   : > { %v1171_v18 = vadd.f32 0.0009, %v1163_v52  ;;  %v758_v36 = vsub.f32 %v742_v60, %v2778_v22  ;;  %v902_v6 = vadd.f32 %v886_v55, %v870_v21  ;;  %v1170_v10 = vadd.f32 0.0009, %v1162_v30  ;;  %v3087_v52 = vld [vmem:[#allocation9_spill] sm:$0xff] }
 0x162   : > { %v924_v42 = vsub.f32 %v908_v32, %v2760_v7  ;;  %v901_v44 = vadd.f32 %v884_v5, %v869_v14  ;;  %v1156_v22 = vadd.f32 0.0001, %v2771_v2  ;;  %v1112_v60 = vadd.f32 0.0001, %v3087_v52 }
 0x163   : > { %v1179_v1 = vmul.f32 %v1171_v18, %v1155_v27  ;;  %v910_v58 = vmul.f32 0.11111111, %v902_v6  ;;  %v1178_v41 = vmul.f32 %v1170_v10, %v1154_v8  ;;  %v1111_v14 = vadd.f32 0.0001, %v3088_v25  ;;  %v3090_v18 = vld [vmem:[#allocation14_spill] sm:$0xff] }
 0x164   : > { %v1164_v46 = vadd.f32 %v924_v42, %v756_v34  ;;  %v909_v35 = vmul.f32 0.11111111, %v901_v44  ;;  %v1010_v51 = vpop.permute.xlu1 %1009  ;;  %v1008_v59 = vpop.permute.xlu0 %1007  ;;  %v1157_v34 = vadd.f32 0.0001, %v2802_v47  ;;  %1594 = vrcp.f32 %v1177_v19 }
 0x165   : > { %v926_v17 = vsub.f32 %v910_v58, %v2780_v45  ;;  %v1031_v63 = vadd.f32 %v1008_v59, %v3083_v38  ;;  %1596 = vrcp.f32 %v1179_v1  ;;  %v1591_v44 = vpop.eup %1590  ;;  %v3092_v59 = vld [vmem:[#allocation31_spill] sm:$0xff]  ;;  %v3093_v1 = vld [vmem:[#allocation28_spill] sm:$0xff] }
 0x166   : > { %v1172_v20 = vadd.f32 0.0009, %v1164_v46  ;;  %v925_v9 = vsub.f32 %v909_v35, %v2790_v54  ;;  %v1032_v54 = vadd.f32 %v1010_v51, %v2549_v28  ;;  %v3086_v28 = vld [vmem:[#allocation13_spill] sm:$0xff]  ;;  %1598 = vrcp.f32 %v1178_v41  ;;  %v3091_v35 = vld [vmem:[#allocation30_spill] sm:$0xff] }
 0x167   : > { %v1166_v48 = vadd.f32 %v926_v17, %v758_v36 }
 0x168   : > { %v1180_v7 = vmul.f32 %v1172_v20, %v1156_v22  ;;  %v1165_v4 = vadd.f32 %v925_v9, %v757_v31  ;;  %v1014_v0 = vpop.permute.xlu1 %1013  ;;  %v1012_v15 = vpop.permute.xlu0 %1011  ;;  %v1114_v9 = vadd.f32 0.0001, %v3093_v1 }
 0x169   : > { %v1174_v39 = vadd.f32 0.0009, %v1166_v48  ;;  %v1034_v33 = vadd.f32 %v1014_v0, %v3085_v43  ;;  %v1033_v50 = vadd.f32 %v1012_v15, %v3086_v28  ;;  %v1593_v19 = vpop.eup %1592 }
 0x16a   : > { %v1173_v37 = vadd.f32 0.0009, %v1165_v4  ;;  %1600 = vrcp.f32 %v1180_v7 }
 0x16b   : > { %v1182_v45 = vmul.f32 %v1174_v39, %v1158_v61 }
 0x16c   : > { %v2875_v26 = vmul.f32 %v1173_v37, %v1157_v34  ;;  %v1018_v2 = vpop.permute.xlu1 %1017  ;;  %v1016_v23 = vpop.permute.xlu0 %1015  ;;  %v3094_v34 = vld [vmem:[#allocation29_spill] sm:$0xff]  ;;  %v3095_v37 = vld [vmem:[#allocation22_spill] sm:$0xff] }
 0x16d   : > { %v1035_v36 = vadd.f32 %v1016_v23, %v3090_v18  ;;  %v1113_v41 = vadd.f32 0.0001, %v3094_v34  ;;  %1602 = vrcp.f32 %v1182_v45  ;;  %v3096_v23 = vld [vmem:[#allocation15_spill] sm:$0xff] }
 0x16e   : > { %1604 = vrcp.f32 %v2875_v26 }
 0x170   : > { %v1042_v29 = vpop.permute.xlu1 %1041  ;;  %v1040_v57 = vpop.permute.xlu0 %1039 }
 0x171   : > { %v1064_v3 = vadd.f32 %v1042_v29, %v1032_v54  ;;  %v1063_v31 = vadd.f32 %v1040_v57, %v1031_v63 }
 0x173   : > { %v1072_v11 = vmul.f32 0.11111111, %v1064_v3  ;;  %v1071_v13 = vmul.f32 0.11111111, %v1063_v31  ;;  %v3097_v3 = vld [vmem:[#allocation34_spill] sm:$0xff]  ;;  %v3098_v31 = vld [vmem:[#allocation35_spill] sm:$0xff] }
 0x174   : > { %v1022_v47 = vpop.permute.xlu1 %1021  ;;  %v1020_v16 = vpop.permute.xlu0 %1019 }
 0x175   : > { %v1088_v24 = vsub.f32 %v1072_v11, %v2696_v40  ;;  %v1087_v49 = vsub.f32 %v1071_v13, %v3084_v53  ;;  %v3089_v40 = vld [vmem:[#allocation21_spill] sm:$0xff]  ;;  %v1037_v54 = vadd.f32 %v1020_v16, %v3096_v23  ;;  %v1595_v13 = vpop.eup %1594  ;;  %v3106_v23 = vld [vmem:[#allocation23_spill] sm:$0xff] }
 0x176   : > { %v1036_v27 = vadd.f32 %v1018_v2, %v3089_v40  ;;  %v1038_v2 = vadd.f32 %v1022_v47, %v3095_v37  ;;  %v1597_v28 = vpop.eup %1596 }
 0x177   : > { %v1120_v62 = vmul.f32 2.0, %v1088_v24  ;;  %v1119_v21 = vmul.f32 2.0, %v1087_v49  ;;  %v3099_v24 = vld [vmem:[#allocation32_spill] sm:$0xff]  ;;  %v1599_v26 = vpop.eup %1598 }
 0x178   : > { %v1046_v56 = vpop.permute.xlu1 %1045  ;;  %v1044_v12 = vpop.permute.xlu0 %1043  ;;  %v1116_v53 = vadd.f32 0.0001, %v3099_v24 }
 0x179   : > { %v1128_v30 = vadd.f32 0.0009, %v1120_v62  ;;  %v1127_v32 = vadd.f32 0.0009, %v1119_v21  ;;  %v1066_v55 = vadd.f32 %v1046_v56, %v1034_v33  ;;  %v1065_v5 = vadd.f32 %v1044_v12, %v1033_v50  ;;  %v3100_v50 = vld [vmem:[#allocation33_spill] sm:$0xff] }
 0x17a   : > { %v1115_v62 = vadd.f32 0.0001, %v3100_v50 }
 0x17b   : > { %v1136_v6 = vmul.f32 %v1128_v30, %v1112_v60  ;;  %v1135_v8 = vmul.f32 %v1127_v32, %v1111_v14  ;;  %v1074_v10 = vmul.f32 0.11111111, %v1066_v55  ;;  %v1073_v42 = vmul.f32 0.11111111, %v1065_v5  ;;  %v3101_v32 = vld [vmem:[#allocation38_spill] sm:$0xff]  ;;  %v3102_v5 = vld [vmem:[#allocation39_spill] sm:$0xff] }
 0x17c   : > { %v1050_v58 = vpop.permute.xlu1 %1049  ;;  %v1048_v46 = vpop.permute.xlu0 %1047 }
 0x17d   : > { %v1090_v51 = vsub.f32 %v1074_v10, %v3091_v35  ;;  %v1089_v17 = vsub.f32 %v1073_v42, %v3092_v59  ;;  %v1068_v22 = vadd.f32 %v1050_v58, %v1036_v27  ;;  %v1067_v20 = vadd.f32 %v1048_v46, %v1035_v36  ;;  %v3104_v46 = vld [vmem:[#allocation36_spill] sm:$0xff]  ;;  %v3105_v35 = vld [vmem:[#allocation37_spill] sm:$0xff] }
 0x17e   : > { %v1336_v48 = vmul.f32 %v1593_v19, %v1136_v6  ;;  %v1335_v4 = vmul.f32 %v1591_v44, %v1135_v8  ;;  %v1601_v8 = vpop.eup %1600  ;;  %v1118_v19 = vadd.f32 0.0001, %v3104_v46 }
 0x17f   : > { %v1122_v0 = vmul.f32 2.0, %v1090_v51  ;;  %v1121_v15 = vmul.f32 2.0, %v1089_v17  ;;  %v1076_v61 = vmul.f32 0.11111111, %v1068_v22  ;;  %v1075_v39 = vmul.f32 0.11111111, %v1067_v20  ;;  %v1603_v22 = vpop.eup %1602 }
 0x180   : > { %v1054_v38 = vpop.permute.xlu1 %1053  ;;  %v1052_v63 = vpop.permute.xlu0 %1051  ;;  %v1344_v12 = vsub.f32 1.0, %v1336_v48  ;;  %v1343_v30 = vsub.f32 1.0, %v1335_v4  ;;  %v1117_v51 = vadd.f32 0.0001, %v3105_v35 }
 0x181   : > { %v1130_v29 = vadd.f32 0.0009, %v1122_v0  ;;  %v1129_v57 = vadd.f32 0.0009, %v1121_v15  ;;  %v1092_v7 = vsub.f32 %v1076_v61, %v3097_v3  ;;  %v1091_v11 = vsub.f32 %v1075_v39, %v3098_v31  ;;  %v1605_v4 = vpop.eup %1604 }
 0x182   : > { %v1070_v49 = vadd.f32 %v1054_v38, %v1038_v2  ;;  %v1069_v45 = vadd.f32 %v1052_v63, %v1037_v54  ;;  %v1352_v59 = vmul.f32 0.5, %v1344_v12  ;;  %v1351_v17 = vmul.f32 0.5, %v1343_v30  ;;  %v3107_v38 = vld [vmem:[#allocation16_spill] sm:$0xff]  ;;  %v3109_v12 = vld [vmem:[#allocation17_spill] sm:$0xff] }
 0x183   : > { %v1138_v43 = vmul.f32 %v1130_v29, %v1114_v9  ;;  %v1137_v47 = vmul.f32 %v1129_v57, %v1113_v41  ;;  %v1124_v33 = vmul.f32 2.0, %v1092_v7  ;;  %v1123_v16 = vmul.f32 2.0, %v1091_v11 }
 0x184   : > { %v1078_v21 = vmul.f32 0.11111111, %v1070_v49  ;;  %v1077_v52 = vmul.f32 0.11111111, %v1069_v45  ;;  %v1258_v60 = vpop.permute.xlu1 %1257  ;;  %v1256_v25 = vpop.permute.xlu0 %1255  ;;  %v1360_v34 = vmax.f32 %v1352_v59, 0.0  ;;  %v1359_v41 = vmax.f32 %v1351_v17, 0.0 }
 0x185   : > { %v1132_v14 = vadd.f32 0.0009, %v1124_v33  ;;  %v1131_v56 = vadd.f32 0.0009, %v1123_v16  ;;  %v1338_v36 = vmul.f32 %v1599_v26, %v1138_v43  ;;  %v1337_v6 = vmul.f32 %v1595_v13, %v1137_v47 }
 0x186   : > { %v1094_v55 = vsub.f32 %v1078_v21, %v3101_v32  ;;  %v1093_v40 = vsub.f32 %v1077_v52, %v3102_v5  ;;  %v1280_v54 = vadd.f32 %v1258_v60, %v3106_v23  ;;  %v1279_v63 = vadd.f32 %v1256_v25, %v3107_v38 }
 0x187   : > { %v1140_v27 = vmul.f32 %v1132_v14, %v1116_v53  ;;  %v1139_v18 = vmul.f32 %v1131_v56, %v1115_v62  ;;  %v1346_v29 = vsub.f32 1.0, %v1338_v36  ;;  %v1345_v57 = vsub.f32 1.0, %v1337_v6  ;;  %v3108_v14 = vld [vmem:[#allocation24_spill] sm:$0xff] }
 0x188   : > { %v1126_v10 = vmul.f32 2.0, %v1094_v55  ;;  %v1125_v42 = vmul.f32 2.0, %v1093_v40  ;;  %v1262_v44 = vpop.permute.xlu1 %1261  ;;  %v1260_v58 = vpop.permute.xlu0 %1259  ;;  %v1368_v13 = vmin.f32 %v1360_v34, 1.0  ;;  %v1367_v24 = vmin.f32 %v1359_v41, 1.0  ;;  %v3110_v40 = vld [vmem:[#allocation25_spill] sm:$0xff]  ;;  %v3113_v34 = vld [vmem:[#allocation19_spill] sm:$0xff] }
 0x189   : > { %v1340_v9 = vmul.f32 %v1601_v8, %v1140_v27  ;;  %v1339_v48 = vmul.f32 %v1597_v28, %v1139_v18  ;;  %v1354_v47 = vmul.f32 0.5, %v1346_v29  ;;  %v1353_v33 = vmul.f32 0.5, %v1345_v57  ;;  %v3111_v18 = vld [vmem:[#allocation18_spill] sm:$0xff] }
 0x18a   : > { %v1134_v20 = vadd.f32 0.0009, %v1126_v10  ;;  %v1133_v1 = vadd.f32 0.0009, %v1125_v42  ;;  %v1282_v56 = vadd.f32 %v1262_v44, %v3108_v14  ;;  %v1281_v30 = vadd.f32 %v1260_v58, %v3109_v12 }
 0x18b   : > { %v1348_v53 = vsub.f32 1.0, %v1340_v9  ;;  %v1347_v49 = vsub.f32 1.0, %v1339_v48  ;;  %v1362_v26 = vmax.f32 %v1354_v47, 0.0  ;;  %v1361_v32 = vmax.f32 %v1353_v33, 0.0 }
 0x18c   : > { %v1142_v0 = vmul.f32 %v1134_v20, %v1118_v19  ;;  %v1141_v15 = vmul.f32 %v1133_v1, %v1117_v51  ;;  %v1266_v61 = vpop.permute.xlu1 %1265  ;;  %v1264_v39 = vpop.permute.xlu0 %1263 }
 0x18d   : > { %v1356_v21 = vmul.f32 0.5, %v1348_v53  ;;  %v1355_v52 = vmul.f32 0.5, %v1347_v49  ;;  %v1284_v27 = vadd.f32 %v1266_v61, %v3110_v40  ;;  %v1283_v36 = vadd.f32 %v1264_v39, %v3111_v18  ;;  %v3112_v61 = vld [vmem:[#allocation26_spill] sm:$0xff] }
 0x18e   : > { %v1342_v37 = vmul.f32 %v1603_v22, %v1142_v0  ;;  %v1341_v2 = vmul.f32 %v1605_v4, %v1141_v15  ;;  %v1370_v58 = vmin.f32 %v1362_v26, 1.0  ;;  %v1369_v35 = vmin.f32 %v1361_v32, 1.0 }
 0x18f   : > { %v1364_v10 = vmax.f32 %v1356_v21, 0.0  ;;  %v1363_v42 = vmax.f32 %v1355_v52, 0.0 }
 0x190   : > { %v1290_v3 = vpop.permute.xlu1 %1289  ;;  %v1288_v7 = vpop.permute.xlu0 %1287  ;;  %v1350_v60 = vsub.f32 1.0, %v1342_v37  ;;  %v1349_v25 = vsub.f32 1.0, %v1341_v2 }
 0x191   : > { %v1312_v31 = vadd.f32 %v1290_v3, %v1280_v54  ;;  %v1311_v11 = vadd.f32 %v1288_v7, %v1279_v63  ;;  %v1372_v48 = vmin.f32 %v1364_v10, 1.0  ;;  %v1371_v4 = vmin.f32 %v1363_v42, 1.0 }
 0x192   : > { %v1358_v46 = vmul.f32 0.5, %v1350_v60  ;;  %v1357_v44 = vmul.f32 0.5, %v1349_v25 }
 0x193   : > { %v1320_v45 = vmul.f32 0.11111111, %v1312_v31  ;;  %v1319_v43 = vmul.f32 0.11111111, %v1311_v11 }
 0x194   : > { %v1270_v16 = vpop.permute.xlu1 %1269  ;;  %v1268_v28 = vpop.permute.xlu0 %1267  ;;  %v1366_v0 = vmax.f32 %v1358_v46, 0.0  ;;  %v1365_v15 = vmax.f32 %v1357_v44, 0.0 }
 0x195   : > { %v1376_v50 = vmul.f32 %v1368_v13, %v1320_v45  ;;  %v1375_v62 = vmul.f32 %v1367_v24, %v1319_v43  ;;  %v1286_v39 = vadd.f32 %v1270_v16, %v3112_v61  ;;  %v1285_v41 = vadd.f32 %v1268_v28, %v3113_v34 }
 0x196   : > { %v1374_v7 = vmin.f32 %v1366_v0, 1.0  ;;  %v1373_v31 = vmin.f32 %v1365_v15, 1.0 }
 0x197   : > { %1386 = vst.msk [vmem:[%s2919_s9 + $0x8] sm:$0x3f] %vm1385_vm2, %v1376_v50 }
 0x198   : > { %1384 = vst.msk [vmem:[%s2919_s9] sm:$0xff] %vm1383_vm3, %v1375_v62  ;;  %v1294_v55 = vpop.permute.xlu1 %1293  ;;  %v1292_v5 = vpop.permute.xlu0 %1291 }
 0x199   : > { %v1314_v6 = vadd.f32 %v1294_v55, %v1282_v56  ;;  %v1313_v8 = vadd.f32 %v1292_v5, %v1281_v30 }
 0x19b   : > { %v1322_v19 = vmul.f32 0.11111111, %v1314_v6  ;;  %v1321_v51 = vmul.f32 0.11111111, %v1313_v8 }
 0x19c   : > { %v1298_v59 = vpop.permute.xlu1 %1297  ;;  %v1296_v17 = vpop.permute.xlu0 %1295 }
 0x19d   : > { %v1378_v22 = vmul.f32 %v1370_v58, %v1322_v19  ;;  %v1377_v20 = vmul.f32 %v1369_v35, %v1321_v51  ;;  %v1316_v1 = vadd.f32 %v1298_v59, %v1284_v27  ;;  %v1315_v9 = vadd.f32 %v1296_v17, %v1283_v36 }
 0x19f   : > { %1388 = vst.msk [vmem:[%s2919_s9 + $0x18] sm:$0x3f] %vm1385_vm2, %v1378_v22  ;;  %v1324_v37 = vmul.f32 0.11111111, %v1316_v1  ;;  %v1323_v2 = vmul.f32 0.11111111, %v1315_v9 }
 0x1a0   : > { %1387 = vst.msk [vmem:[%s2919_s9 + $0x10] sm:$0xff] %vm1383_vm3, %v1377_v20  ;;  %v1302_v23 = vpop.permute.xlu1 %1301  ;;  %v1300_v54 = vpop.permute.xlu0 %1299 }
 0x1a1   : > { %v1380_v38 = vmul.f32 %v1372_v48, %v1324_v37  ;;  %v1379_v63 = vmul.f32 %v1371_v4, %v1323_v2  ;;  %v1318_v29 = vadd.f32 %v1302_v23, %v1286_v39  ;;  %v1317_v57 = vadd.f32 %v1300_v54, %v1285_v41 }
 0x1a3   : > { %1390 = vst.msk [vmem:[%s2919_s9 + $0x28] sm:$0x3f] %vm1385_vm2, %v1380_v38  ;;  %v1326_v3 = vmul.f32 0.11111111, %v1318_v29  ;;  %v1325_v11 = vmul.f32 0.11111111, %v1317_v57 }
 0x1a4   : > { %1389 = vst.msk [vmem:[%s2919_s9 + $0x20] sm:$0xff] %vm1383_vm3, %v1379_v63 }
 0x1a5   : > { %v1382_v13 = vmul.f32 %v1374_v7, %v1326_v3  ;;  %v1381_v24 = vmul.f32 %v1373_v31, %v1325_v11 }
 0x1a7   : > { %1392 = vst.msk [vmem:[%s2919_s9 + $0x38] sm:$0x3f] %vm1385_vm2, %v1382_v13 }
 0x1a8   : > { %1391 = vst.msk [vmem:[%s2919_s9 + $0x30] sm:$0xff] %vm1383_vm3, %v1381_v24 }
 0x1a9 PF: > { %p16_p2 = scmp.ge.s32.totalorder %s1785_s17, 4   ;;  %s3114_s12 = smov %s1726_s13 }
 0x1aa   : > { %s3115_s13 = smov %s1730_s14  ;;  %s3116_s14 = smov %s1795_s20 }
 0x1ab   : > { %s3117_s15 = smov %s1785_s17  ;;  %18 = sbr.rel (!%p16_p2) target bundleno = 5 (0x5), region = 96 }
 0x1b2   :  { %1417 = vsyncpa [#allocation3], 1 }
 0x1b3   :  { %1419 = vsyncpa [#allocation3 + $0x1], 1 }
 0x1b4   :  { %1420 = vsyncpa [#allocation5], 1 }
 0x1b5   :  { %1422 = vsyncpa [#allocation5 + $0x1], 1 }

</bundles_post_ra>
